<compile_context>
chip_gen: v7x
topology: tpu7x:2x2x1
jax: 0.10.0
libtpu: 0.0.40
codegen_flags: <defaults>
</compile_context>

<pallas_src>
import functools
import math

import jax
import jax.numpy as jnp
from jax import lax
from jax.experimental import pallas as pl
from jax.experimental.pallas import tpu as pltpu


# ----------------------------------------------------------------------------
# Fused kernel: squeeze 1x1 + ReLU + pruning gate (at h==0), then per-H-tile
# expand1x1 + gated expand3x3 into a single lane-dense output slab.
# ----------------------------------------------------------------------------
def _fire_dp_kernel(x_ref, ws_ref, bs_ref, wp_ref, bp_ref,
                    w1_ref, b1_ref, w3_ref, b3_ref,
                    o_ref, spad, w3g_ref, *, H, W, TH, mxu_dtype):
    # x_ref  : (1, H*W, Cin)  full NHWC map (rows-flattened) for this batch element
    # ws_ref : (Cin, Cs)  bs_ref: (1, Cs)      squeeze weights
    # wp_ref : (Cs, Cs)   bp_ref: (1, Cs)      pruning-gate linear
    # w1_ref : (Cs, E1)   b1_ref: (1, E1)      expand1x1
    # w3_ref : (9, Cs, E3) b3_ref: (1, E3)     expand3x3 (HWIO flattened to taps)
    # o_ref  : (1, TH, W, E1+E3)               output H tile (lane-dense slab)
    # spad   : VMEM (H_pad+2, W+2, Cs)         zero-padded resident s (per image)
    # w3g_ref: VMEM (9*Cs, E3)                 gate-folded 3x3 weights (per image)
    h = pl.program_id(1)
    Cs = ws_ref.shape[1]
    E1 = w1_ref.shape[1]
    E3 = w3_ref.shape[2]

    # -------- per-image setup: squeeze, gate, weight-fold (h == 0 only) --------
    @pl.when(h == 0)
    def _():
        # squeeze 1x1 + ReLU over the whole map: one MXU matmul, M = H*W.
        x_rows = x_ref[0].astype(mxu_dtype)                           # (H*W, Cin)
        s = jnp.dot(x_rows, ws_ref[...].astype(mxu_dtype),
                    preferred_element_type=jnp.float32)
        s = jnp.maximum(s + bs_ref[...].astype(jnp.float32), 0.0)     # (H*W, Cs) f32

        # Resident zero-padded copy of s.  Rows H..H_pad stay zero so the ragged
        # last H tile reads zeros (its out-of-bounds output rows are dropped).
        spad[...] = jnp.zeros_like(spad)
        spad[1:H + 1, 1:W + 1, :] = s.reshape(H, W, Cs).astype(spad.dtype)

        # DynamicPruning gate: global average pool -> linear -> sigmoid.
        # TODO(synk): DynamicPruning source not provided; SE-style gate assumed.
        pooled = jnp.sum(s, axis=0, keepdims=True) * (1.0 / float(H * W))  # (1, Cs)
        z = jnp.dot(pooled.astype(mxu_dtype), wp_ref[...].astype(mxu_dtype),
                    preferred_element_type=jnp.float32)
        g = jax.nn.sigmoid(z + bp_ref[...].astype(jnp.float32))       # (1, Cs) f32

        # Fold the gate into the 3x3 weights once per image:
        #   conv3x3(g*s) == im2col(zero-padded s) @ (per-channel g-scaled w3)
        # (gating the zero padding is a no-op).  g lives with Cs on lanes; move
        # it to sublanes with a masked lane-reduce (no standalone tiny transpose).
        rid = lax.broadcasted_iota(jnp.int32, (Cs, Cs), 0)
        cid = lax.broadcasted_iota(jnp.int32, (Cs, Cs), 1)
        gcol = jnp.sum(jnp.where(rid == cid, jnp.broadcast_to(g, (Cs, Cs)), 0.0),
                       axis=1, keepdims=True)                         # (Cs, 1) == g^T
        gscale = jnp.broadcast_to(gcol, (Cs, E3))                     # (Cs, E3)
        w3g = w3_ref[...].astype(jnp.float32) * gscale[None, :, :]    # (9, Cs, E3)
        w3g_ref[...] = w3g.reshape(9 * Cs, E3).astype(w3g_ref.dtype)

    # ---------------- expand phase: one H tile per grid step ----------------
    row0 = h * TH
    # im2col taps from the padded resident map (reads stay in bounds because
    # spad has n_h*TH + 2 rows).
    taps = []
    for kh in range(3):
        rows = spad[pl.ds(row0 + kh, TH), :, :]                       # (TH, W+2, Cs)
        for kw in range(3):
            taps.append(rows[:, kw:kw + W, :])                        # (TH, W, Cs)

    # expand1x1 on the UN-gated s rows of this tile == the centre tap (reused).
    s_tile = taps[4].reshape(TH * W, Cs)
    e1 = jnp.dot(s_tile, w1_ref[...].astype(mxu_dtype),
                 preferred_element_type=jnp.float32)
    e1 = jnp.maximum(e1 + b1_ref[...].astype(jnp.float32), 0.0)       # (TH*W, E1)

    if Cs >= 128:
        # Wide Cs: 9 accumulated MXU dots avoid the lane-packing concat.
        e3 = jnp.zeros((TH * W, E3), jnp.float32)
        for k in range(9):
            tap = taps[k].reshape(TH * W, Cs)
            e3 = e3 + jnp.dot(tap, w3g_ref[k * Cs:(k + 1) * Cs, :],
                              preferred_element_type=jnp.float32)
    else:
        # Small Cs (typical Fire block): one matmul with deep contraction K = 9*Cs.
        patches = jnp.concatenate(taps, axis=-1).reshape(TH * W, 9 * Cs)
        e3 = jnp.dot(patches, w3g_ref[...], preferred_element_type=jnp.float32)
    e3 = jnp.maximum(e3 + b3_ref[...].astype(jnp.float32), 0.0)       # (TH*W, E3)

    # in-kernel concat -> single lane-dense (E1+E3) store.
    out = jnp.concatenate([e1, e3], axis=-1).reshape(TH, W, E1 + E3)
    o_ref[...] = out[None].astype(o_ref.dtype)


# ----------------------------------------------------------------------------
# Full FireDP forward
# ----------------------------------------------------------------------------
def fire_dp_forward(x_nchw, p, *, h_tile=8, mxu_dtype=jnp.bfloat16):
    # h_tile: expand-phase H-tile; raise so TH*W >= 256-512 rows at production
    #         sizes (re-derive VMEM budget for v7x's 64 MiB).
    # mxu_dtype: operand dtype fed to the MXU and used for the resident padded-s
    #         scratch; bf16 recommended on v6e/v7x, f32 for bit-tight checks.
    N, Cin, H, W = x_nchw.shape
    Cs = p["ws"].shape[1]
    E1 = p["w1"].shape[1]
    E3 = p["w3"].shape[-1]
    L = H * W

    TH = min(h_tile, H)
    n_h = pl.cdiv(H, TH)          # ragged last tile OK: OOB output rows dropped,
    H_pad = n_h * TH              # spad padded to n_h*TH rows keeps reads in bounds.

    x_rows = jnp.transpose(x_nchw, (0, 2, 3, 1)).reshape(N, L, Cin)   # NHWC rows
    w3_flat = p["w3"].reshape(9, Cs, E3)                              # HWIO -> taps

    kernel = functools.partial(_fire_dp_kernel, H=H, W=W, TH=TH,
                               mxu_dtype=mxu_dtype)

    flops = N * (2 * L * Cin * Cs + 2 * Cs * Cs + 9 * Cs * E3
                 + 2 * L * Cs * E1 + 2 * L * 9 * Cs * E3)
    bytes_accessed = 4 * (N * L * Cin + N * L * (E1 + E3)
                          + Cin * Cs + Cs * Cs + Cs * E1 + 9 * Cs * E3
                          + 2 * Cs + E1 + E3)

    out_nhwc = pl.pallas_call(
        kernel,
        out_shape=jax.ShapeDtypeStruct((N, H, W, E1 + E3), x_nchw.dtype),
        grid=(N, n_h),
        in_specs=[
            pl.BlockSpec((1, L, Cin), lambda n, h: (n, 0, 0)),
            pl.BlockSpec((Cin, Cs), lambda n, h: (0, 0)),
            pl.BlockSpec((1, Cs), lambda n, h: (0, 0)),
            pl.BlockSpec((Cs, Cs), lambda n, h: (0, 0)),
            pl.BlockSpec((1, Cs), lambda n, h: (0, 0)),
            pl.BlockSpec((Cs, E1), lambda n, h: (0, 0)),
            pl.BlockSpec((1, E1), lambda n, h: (0, 0)),
            pl.BlockSpec((9, Cs, E3), lambda n, h: (0, 0, 0)),
            pl.BlockSpec((1, E3), lambda n, h: (0, 0)),
        ],
        out_specs=pl.BlockSpec((1, TH, W, E1 + E3), lambda n, h: (n, h, 0, 0)),
        scratch_shapes=[
            pltpu.VMEM((H_pad + 2, W + 2, Cs), mxu_dtype),   # padded resident s
            pltpu.VMEM((9 * Cs, E3), mxu_dtype),             # gate-folded 3x3 weights
        ],
        compiler_params=pltpu.CompilerParams(
            dimension_semantics=("parallel", "arbitrary"),
            vmem_limit_bytes=32 * 1024 * 1024),
        cost_estimate=pl.CostEstimate(flops=flops, transcendentals=N * Cs,
                                      bytes_accessed=bytes_accessed),
    )(x_rows, p["ws"], p["bs"], p["wp"], p["bp"],
      p["w1"], p["b1"], w3_flat, p["b3"])

    # NCHW external interface (concat already fused in-kernel; single transpose).
    return jnp.transpose(out_nhwc, (0, 3, 1, 2))


# ----------------------------------------------------------------------------
# Pure-JAX reference (same math, no Pallas) for a correctness check
# ----------------------------------------------------------------------------
def fire_dp_reference(x_nchw, p):
    x = jnp.transpose(x_nchw, (0, 2, 3, 1))
    s = jax.nn.relu(jnp.einsum("nhwc,cd->nhwd", x, p["ws"]) + p["bs"][0])
    pooled = jnp.mean(s, axis=(1, 2))
    gate = jax.nn.sigmoid(pooled @ p["wp"] + p["bp"][0])
    dp = s * gate[:, None, None, :]
    e1 = jax.nn.relu(jnp.einsum("nhwc,cd->nhwd", s, p["w1"]) + p["b1"][0])
    e3 = jax.nn.relu(
        lax.conv_general_dilated(
            dp, p["w3"], (1, 1), "SAME",
            dimension_numbers=("NHWC", "HWIO", "NHWC")) + p["b3"][0])
    out = jnp.concatenate([e1, e3], axis=-1)
    return jnp.transpose(out, (0, 3, 1, 2))


def init_params(key, cin, cs, e1, e3):
    ks = jax.random.split(key, 8)
    def w(k, shape, fan_in):
        return jax.random.normal(k, shape, jnp.float32) / math.sqrt(fan_in)
    return {
        "ws": w(ks[0], (cin, cs), cin),         "bs": w(ks[1], (1, cs), cin),
        "wp": w(ks[2], (cs, cs), cs),           "bp": w(ks[3], (1, cs), cs),
        "w1": w(ks[4], (cs, e1), cs),           "b1": w(ks[5], (1, e1), cs),
        "w3": w(ks[6], (3, 3, cs, e3), 9 * cs), "b3": w(ks[7], (1, e3), 9 * cs),
    }


if __name__ == "__main__":
    N, Cin, H, W = 2, 4, 16, 16
    Cs, E1, E3 = 8, 8, 8

    key = jax.random.PRNGKey(0)
    k_x, k_p = jax.random.split(key)
    x = jax.random.normal(k_x, (N, Cin, H, W), jnp.float32)
    params = init_params(k_p, Cin, Cs, E1, E3)

    ref = jax.block_until_ready(fire_dp_reference(x, params))

    # f32 MXU feed: tight check against the f32 reference.
    out_f32 = jax.block_until_ready(
        fire_dp_forward(x, params, mxu_dtype=jnp.float32))
    assert out_f32.shape == (N, E1 + E3, H, W), out_f32.shape
    assert jnp.allclose(out_f32, ref, atol=1e-4, rtol=1e-4), float(
        jnp.max(jnp.abs(out_f32 - ref)))

    # bf16 MXU feed (recommended on v6e / v7x): looser tolerance.
    out_bf16 = jax.block_until_ready(
        fire_dp_forward(x, params, mxu_dtype=jnp.bfloat16))
    assert out_bf16.shape == (N, E1 + E3, H, W), out_bf16.shape
    assert jnp.allclose(out_bf16, ref, atol=8e-2, rtol=8e-2), float(
        jnp.max(jnp.abs(out_bf16 - ref)))

    print("KERNEL_OK")
</pallas_src>

<mosaic_0001>
module attributes {stable_mosaic.version = 11 : i64} {
  func.func @_fire_dp_kernel(%arg0: i32, %arg1: i32, %arg2: memref<1x256x4xf32, #tpu.memory_space<vmem>>, %arg3: memref<4x8xf32, #tpu.memory_space<vmem>>, %arg4: memref<1x8xf32, #tpu.memory_space<vmem>>, %arg5: memref<8x8xf32, #tpu.memory_space<vmem>>, %arg6: memref<1x8xf32, #tpu.memory_space<vmem>>, %arg7: memref<8x8xf32, #tpu.memory_space<vmem>>, %arg8: memref<1x8xf32, #tpu.memory_space<vmem>>, %arg9: memref<9x8x8xf32, #tpu.memory_space<vmem>>, %arg10: memref<1x8xf32, #tpu.memory_space<vmem>>, %arg11: memref<1x8x16x16xf32, #tpu.memory_space<vmem>>, %arg12: memref<18x18x8xf32, #tpu.memory_space<vmem>>, %arg13: memref<72x8xf32, #tpu.memory_space<vmem>>) attributes {dimension_semantics = [#tpu.dimension_semantics<parallel>, #tpu.dimension_semantics<arbitrary>], iteration_bounds = array<i64: 2, 2>, scalar_prefetch = 0 : i64, scratch_operands = 2 : i64, tpu.core_type = #tpu.core_type<tc>, window_params = [{transform_indices = @transform_0, window_bounds = array<i64: 1, 256, 4>}, {pipeline_mode = #tpu.pipeline_mode<synchronous>, transform_indices = @transform_1, window_bounds = array<i64: 4, 8>}, {pipeline_mode = #tpu.pipeline_mode<synchronous>, transform_indices = @transform_2, window_bounds = array<i64: 1, 8>}, {pipeline_mode = #tpu.pipeline_mode<synchronous>, transform_indices = @transform_3, window_bounds = array<i64: 8, 8>}, {pipeline_mode = #tpu.pipeline_mode<synchronous>, transform_indices = @transform_4, window_bounds = array<i64: 1, 8>}, {pipeline_mode = #tpu.pipeline_mode<synchronous>, transform_indices = @transform_5, window_bounds = array<i64: 8, 8>}, {pipeline_mode = #tpu.pipeline_mode<synchronous>, transform_indices = @transform_6, window_bounds = array<i64: 1, 8>}, {pipeline_mode = #tpu.pipeline_mode<synchronous>, transform_indices = @transform_7, window_bounds = array<i64: 9, 8, 8>}, {pipeline_mode = #tpu.pipeline_mode<synchronous>, transform_indices = @transform_8, window_bounds = array<i64: 1, 8>}, {transform_indices = @transform_9, window_bounds = array<i64: 1, 8, 16, 16>}]} {
    %c0_i32 = arith.constant 0 : i32
    %0 = arith.cmpi eq, %arg1, %c0_i32 : i32
    %1 = arith.extui %0 : i1 to i32
    %c0_i32_0 = arith.constant 0 : i32
    %2 = arith.cmpi ne, %1, %c0_i32_0 : i32
    scf.if %2 {
      %c0_22 = arith.constant 0 : index
      %c0_23 = arith.constant 0 : index
      %c0_24 = arith.constant 0 : index
      %43 = vector.load %arg2[%c0_22, %c0_23, %c0_24] : memref<1x256x4xf32, #tpu.memory_space<vmem>>, vector<1x256x4xf32>
      %44 = vector.shape_cast %43 : vector<1x256x4xf32> to vector<256x4xf32>
      %c0_25 = arith.constant 0 : index
      %c0_26 = arith.constant 0 : index
      %45 = vector.load %arg3[%c0_25, %c0_26] : memref<4x8xf32, #tpu.memory_space<vmem>>, vector<4x8xf32>
      %cst_27 = arith.constant dense<0.000000e+00> : vector<256x8xf32>
      %46 = tpu.matmul %44, %45, %cst_27 {dimension_numbers = #tpu.dot_dimension_numbers<[1], [0], [0], [1], [0, 0, 1, 1], [], []>} : vector<256x4xf32>, vector<4x8xf32>, vector<256x8xf32> -> vector<256x8xf32>
      %c0_28 = arith.constant 0 : index
      %c0_29 = arith.constant 0 : index
      %47 = vector.load %arg4[%c0_28, %c0_29] : memref<1x8xf32, #tpu.memory_space<vmem>>, vector<1x8xf32>
      %48 = vector.broadcast %47 : vector<1x8xf32> to vector<256x8xf32>
      %49 = arith.addf %46, %48 : vector<256x8xf32>
      %cst_30 = arith.constant 0.000000e+00 : f32
      %50 = vector.broadcast %cst_30 : f32 to vector<256x8xf32>
      %51 = arith.maximumf %49, %50 : vector<256x8xf32>
      %cst_31 = arith.constant 0.000000e+00 : f32
      %52 = vector.broadcast %cst_31 : f32 to vector<18x18x8xf32>
      %c0_32 = arith.constant 0 : index
      %c0_33 = arith.constant 0 : index
      %c0_34 = arith.constant 0 : index
      %53 = vector.load %arg12[%c0_32, %c0_33, %c0_34] : memref<18x18x8xf32, #tpu.memory_space<vmem>>, vector<18x18x8xf32>
      tpu.vector_store %arg12[%c0_32, %c0_33, %c0_34], %52 {strides = array<i32>} : memref<18x18x8xf32, #tpu.memory_space<vmem>>, vector<18x18x8xf32>,
      %54 = vector.shape_cast %51 : vector<256x8xf32> to vector<16x16x8xf32>
      %c1 = arith.constant 1 : index
      %c1_35 = arith.constant 1 : index
      %c0_36 = arith.constant 0 : index
      %55 = vector.load %arg12[%c1, %c1_35, %c0_36] : memref<18x18x8xf32, #tpu.memory_space<vmem>>, vector<16x16x8xf32>
      tpu.vector_store %arg12[%c1, %c1_35, %c0_36], %54 {strides = array<i32>} : memref<18x18x8xf32, #tpu.memory_space<vmem>>, vector<16x16x8xf32>,
      %cst_37 = arith.constant dense<0.000000e+00> : vector<8xf32>
      %56 = vector.multi_reduction <add>, %51, %cst_37 [0] : vector<256x8xf32> to vector<8xf32>
      %57 = vector.shape_cast %56 : vector<8xf32> to vector<1x8xf32>
      %cst_38 = arith.constant 3.906250e-03 : f32
      %58 = vector.broadcast %cst_38 : f32 to vector<1x8xf32>
      %59 = arith.mulf %57, %58 : vector<1x8xf32>
      %c0_39 = arith.constant 0 : index
      %c0_40 = arith.constant 0 : index
      %60 = vector.load %arg5[%c0_39, %c0_40] : memref<8x8xf32, #tpu.memory_space<vmem>>, vector<8x8xf32>
      %cst_41 = arith.constant dense<0.000000e+00> : vector<1x8xf32>
      %61 = tpu.matmul %59, %60, %cst_41 {dimension_numbers = #tpu.dot_dimension_numbers<[1], [0], [0], [1], [0, 0, 1, 1], [], []>} : vector<1x8xf32>, vector<8x8xf32>, vector<1x8xf32> -> vector<1x8xf32>
      %c0_42 = arith.constant 0 : index
      %c0_43 = arith.constant 0 : index
      %62 = vector.load %arg6[%c0_42, %c0_43] : memref<1x8xf32, #tpu.memory_space<vmem>>, vector<1x8xf32>
      %63 = arith.addf %61, %62 : vector<1x8xf32>
      %64 = arith.negf %63 : vector<1x8xf32>
      %65 = math.exp %64 : vector<1x8xf32>
      %cst_44 = arith.constant 1.000000e+00 : f32
      %66 = vector.broadcast %cst_44 : f32 to vector<1x8xf32>
      %67 = arith.addf %66, %65 : vector<1x8xf32>
      %68 = arith.divf %66, %67 : vector<1x8xf32>
      %69 = tpu.iota {dimensions = array<i32: 0>} : vector<8x8xi32>
      %70 = tpu.iota {dimensions = array<i32: 1>} : vector<8x8xi32>
      %71 = arith.cmpi eq, %69, %70 : vector<8x8xi32>
      %72 = vector.shape_cast %68 : vector<1x8xf32> to vector<1x8xf32>
      %73 = vector.broadcast %72 : vector<1x8xf32> to vector<8x8xf32>
      %cst_45 = arith.constant 0.000000e+00 : f32
      %74 = vector.broadcast %cst_45 : f32 to vector<8x8xf32>
      %75 = arith.select %71, %73, %74 : vector<8x8xi1>, vector<8x8xf32>
      %cst_46 = arith.constant dense<0.000000e+00> : vector<8xf32>
      %76 = vector.multi_reduction <add>, %75, %cst_46 [1] : vector<8x8xf32> to vector<8xf32>
      %77 = vector.shape_cast %76 : vector<8xf32> to vector<8x1xf32>
      %78 = vector.shape_cast %77 : vector<8x1xf32> to vector<8x1xf32>
      %79 = vector.broadcast %78 : vector<8x1xf32> to vector<8x8xf32>
      %c0_47 = arith.constant 0 : index
      %c0_48 = arith.constant 0 : index
      %c0_49 = arith.constant 0 : index
      %80 = vector.load %arg9[%c0_47, %c0_48, %c0_49] : memref<9x8x8xf32, #tpu.memory_space<vmem>>, vector<9x8x8xf32>
      %81 = vector.shape_cast %79 : vector<8x8xf32> to vector<1x8x8xf32>
      %82 = vector.broadcast %81 : vector<1x8x8xf32> to vector<9x8x8xf32>
      %83 = arith.mulf %80, %82 : vector<9x8x8xf32>
      %84 = vector.shape_cast %83 : vector<9x8x8xf32> to vector<72x8xf32>
      %c0_50 = arith.constant 0 : index
      %c0_51 = arith.constant 0 : index
      %85 = vector.load %arg13[%c0_50, %c0_51] : memref<72x8xf32, #tpu.memory_space<vmem>>, vector<72x8xf32>
      tpu.vector_store %arg13[%c0_50, %c0_51], %84 {strides = array<i32>} : memref<72x8xf32, #tpu.memory_space<vmem>>, vector<72x8xf32>,
    } else {
    }
    %c8_i32 = arith.constant 8 : i32
    %3 = arith.muli %arg1, %c8_i32 : i32
    %c0_i32_1 = arith.constant 0 : i32
    %4 = arith.addi %3, %c0_i32_1 : i32
    %5 = arith.index_cast %4 : i32 to index
    %c0 = arith.constant 0 : index
    %c0_2 = arith.constant 0 : index
    %6 = vector.load %arg12[%5, %c0, %c0_2] : memref<18x18x8xf32, #tpu.memory_space<vmem>>, vector<8x18x8xf32>
    %7 = vector.extract_strided_slice %6 {offsets = [0, 0, 0], sizes = [8, 16, 8], strides = [1, 1, 1]} : vector<8x18x8xf32> to vector<8x16x8xf32>
    %8 = vector.extract_strided_slice %6 {offsets = [0, 1, 0], sizes = [8, 16, 8], strides = [1, 1, 1]} : vector<8x18x8xf32> to vector<8x16x8xf32>
    %9 = vector.extract_strided_slice %6 {offsets = [0, 2, 0], sizes = [8, 16, 8], strides = [1, 1, 1]} : vector<8x18x8xf32> to vector<8x16x8xf32>
    %c1_i32 = arith.constant 1 : i32
    %10 = arith.addi %3, %c1_i32 : i32
    %11 = arith.index_cast %10 : i32 to index
    %c0_3 = arith.constant 0 : index
    %c0_4 = arith.constant 0 : index
    %12 = vector.load %arg12[%11, %c0_3, %c0_4] : memref<18x18x8xf32, #tpu.memory_space<vmem>>, vector<8x18x8xf32>
    %13 = vector.extract_strided_slice %12 {offsets = [0, 0, 0], sizes = [8, 16, 8], strides = [1, 1, 1]} : vector<8x18x8xf32> to vector<8x16x8xf32>
    %14 = vector.extract_strided_slice %12 {offsets = [0, 1, 0], sizes = [8, 16, 8], strides = [1, 1, 1]} : vector<8x18x8xf32> to vector<8x16x8xf32>
    %15 = vector.extract_strided_slice %12 {offsets = [0, 2, 0], sizes = [8, 16, 8], strides = [1, 1, 1]} : vector<8x18x8xf32> to vector<8x16x8xf32>
    %c2_i32 = arith.constant 2 : i32
    %16 = arith.addi %3, %c2_i32 : i32
    %17 = arith.index_cast %16 : i32 to index
    %c0_5 = arith.constant 0 : index
    %c0_6 = arith.constant 0 : index
    %18 = vector.load %arg12[%17, %c0_5, %c0_6] : memref<18x18x8xf32, #tpu.memory_space<vmem>>, vector<8x18x8xf32>
    %19 = vector.extract_strided_slice %18 {offsets = [0, 0, 0], sizes = [8, 16, 8], strides = [1, 1, 1]} : vector<8x18x8xf32> to vector<8x16x8xf32>
    %20 = vector.extract_strided_slice %18 {offsets = [0, 1, 0], sizes = [8, 16, 8], strides = [1, 1, 1]} : vector<8x18x8xf32> to vector<8x16x8xf32>
    %21 = vector.extract_strided_slice %18 {offsets = [0, 2, 0], sizes = [8, 16, 8], strides = [1, 1, 1]} : vector<8x18x8xf32> to vector<8x16x8xf32>
    %22 = vector.shape_cast %14 : vector<8x16x8xf32> to vector<128x8xf32>
    %c0_7 = arith.constant 0 : index
    %c0_8 = arith.constant 0 : index
    %23 = vector.load %arg7[%c0_7, %c0_8] : memref<8x8xf32, #tpu.memory_space<vmem>>, vector<8x8xf32>
    %cst = arith.constant dense<0.000000e+00> : vector<128x8xf32>
    %24 = tpu.matmul %22, %23, %cst {dimension_numbers = #tpu.dot_dimension_numbers<[1], [0], [0], [1], [0, 0, 1, 1], [], []>} : vector<128x8xf32>, vector<8x8xf32>, vector<128x8xf32> -> vector<128x8xf32>
    %c0_9 = arith.constant 0 : index
    %c0_10 = arith.constant 0 : index
    %25 = vector.load %arg8[%c0_9, %c0_10] : memref<1x8xf32, #tpu.memory_space<vmem>>, vector<1x8xf32>
    %26 = vector.broadcast %25 : vector<1x8xf32> to vector<128x8xf32>
    %27 = arith.addf %24, %26 : vector<128x8xf32>
    %cst_11 = arith.constant 0.000000e+00 : f32
    %28 = vector.broadcast %cst_11 : f32 to vector<128x8xf32>
    %29 = arith.maximumf %27, %28 : vector<128x8xf32>
    %30 = tpu.concatenate %7, %8, %9, %13, %14, %15, %19, %20, %21 in 2 : vector<8x16x8xf32>, vector<8x16x8xf32>, vector<8x16x8xf32>, vector<8x16x8xf32>, vector<8x16x8xf32>, vector<8x16x8xf32>, vector<8x16x8xf32>, vector<8x16x8xf32>, vector<8x16x8xf32> -> vector<8x16x72xf32>
    %31 = vector.shape_cast %30 : vector<8x16x72xf32> to vector<128x72xf32>
    %c0_12 = arith.constant 0 : index
    %c0_13 = arith.constant 0 : index
    %32 = vector.load %arg13[%c0_12, %c0_13] : memref<72x8xf32, #tpu.memory_space<vmem>>, vector<72x8xf32>
    %cst_14 = arith.constant dense<0.000000e+00> : vector<128x8xf32>
    %33 = tpu.matmul %31, %32, %cst_14 {dimension_numbers = #tpu.dot_dimension_numbers<[1], [0], [0], [1], [0, 0, 1, 1], [], []>} : vector<128x72xf32>, vector<72x8xf32>, vector<128x8xf32> -> vector<128x8xf32>
    %c0_15 = arith.constant 0 : index
    %c0_16 = arith.constant 0 : index
    %34 = vector.load %arg10[%c0_15, %c0_16] : memref<1x8xf32, #tpu.memory_space<vmem>>, vector<1x8xf32>
    %35 = vector.broadcast %34 : vector<1x8xf32> to vector<128x8xf32>
    %36 = arith.addf %33, %35 : vector<128x8xf32>
    %cst_17 = arith.constant 0.000000e+00 : f32
    %37 = vector.broadcast %cst_17 : f32 to vector<128x8xf32>
    %38 = arith.maximumf %36, %37 : vector<128x8xf32>
    %39 = tpu.concatenate %29, %38 in 1 : vector<128x8xf32>, vector<128x8xf32> -> vector<128x16xf32>
    %40 = vector.shape_cast %39 : vector<128x16xf32> to vector<8x16x16xf32>
    %41 = vector.shape_cast %40 : vector<8x16x16xf32> to vector<1x8x16x16xf32>
    %c0_18 = arith.constant 0 : index
    %c0_19 = arith.constant 0 : index
    %c0_20 = arith.constant 0 : index
    %c0_21 = arith.constant 0 : index
    %42 = vector.load %arg11[%c0_18, %c0_19, %c0_20, %c0_21] : memref<1x8x16x16xf32, #tpu.memory_space<vmem>>, vector<1x8x16x16xf32>
    tpu.vector_store %arg11[%c0_18, %c0_19, %c0_20, %c0_21], %41 {strides = array<i32>} : memref<1x8x16x16xf32, #tpu.memory_space<vmem>>, vector<1x8x16x16xf32>,
    return
  }
  func.func @transform_0(%arg0: i32, %arg1: i32) -> (i32, i32, i32) {
    %c0_i32 = arith.constant 0 : i32
    %c0_i32_0 = arith.constant 0 : i32
    %c0_i32_1 = arith.constant 0 : i32
    return %arg0, %c0_i32, %c0_i32_0 : i32, i32, i32
  }
  func.func @transform_1(%arg0: i32, %arg1: i32) -> (i32, i32) {
    %c0_i32 = arith.constant 0 : i32
    %c0_i32_0 = arith.constant 0 : i32
    %c0_i32_1 = arith.constant 0 : i32
    return %c0_i32, %c0_i32_0 : i32, i32
  }
  func.func @transform_2(%arg0: i32, %arg1: i32) -> (i32, i32) {
    %c0_i32 = arith.constant 0 : i32
    %c0_i32_0 = arith.constant 0 : i32
    %c0_i32_1 = arith.constant 0 : i32
    return %c0_i32, %c0_i32_0 : i32, i32
  }
  func.func @transform_3(%arg0: i32, %arg1: i32) -> (i32, i32) {
    %c0_i32 = arith.constant 0 : i32
    %c0_i32_0 = arith.constant 0 : i32
    %c0_i32_1 = arith.constant 0 : i32
    return %c0_i32, %c0_i32_0 : i32, i32
  }
  func.func @transform_4(%arg0: i32, %arg1: i32) -> (i32, i32) {
    %c0_i32 = arith.constant 0 : i32
    %c0_i32_0 = arith.constant 0 : i32
    %c0_i32_1 = arith.constant 0 : i32
    return %c0_i32, %c0_i32_0 : i32, i32
  }
  func.func @transform_5(%arg0: i32, %arg1: i32) -> (i32, i32) {
    %c0_i32 = arith.constant 0 : i32
    %c0_i32_0 = arith.constant 0 : i32
    %c0_i32_1 = arith.constant 0 : i32
    return %c0_i32, %c0_i32_0 : i32, i32
  }
  func.func @transform_6(%arg0: i32, %arg1: i32) -> (i32, i32) {
    %c0_i32 = arith.constant 0 : i32
    %c0_i32_0 = arith.constant 0 : i32
    %c0_i32_1 = arith.constant 0 : i32
    return %c0_i32, %c0_i32_0 : i32, i32
  }
  func.func @transform_7(%arg0: i32, %arg1: i32) -> (i32, i32, i32) {
    %c0_i32 = arith.constant 0 : i32
    %c0_i32_0 = arith.constant 0 : i32
    %c0_i32_1 = arith.constant 0 : i32
    %c0_i32_2 = arith.constant 0 : i32
    return %c0_i32, %c0_i32_0, %c0_i32_1 : i32, i32, i32
  }
  func.func @transform_8(%arg0: i32, %arg1: i32) -> (i32, i32) {
    %c0_i32 = arith.constant 0 : i32
    %c0_i32_0 = arith.constant 0 : i32
    %c0_i32_1 = arith.constant 0 : i32
    return %c0_i32, %c0_i32_0 : i32, i32
  }
  func.func @transform_9(%arg0: i32, %arg1: i32) -> (i32, i32, i32, i32) {
    %c0_i32 = arith.constant 0 : i32
    %c0_i32_0 = arith.constant 0 : i32
    %c0_i32_1 = arith.constant 0 : i32
    return %arg0, %arg1, %c0_i32, %c0_i32_0 : i32, i32, i32, i32
  }
}

</mosaic_0001>

<bundles_post_ra>
// kernel: tpu_custom_call.1
= control target key start
LH: loop header
LB: loop body
LE: loop exit
PB: predicated region body
PF: predicated region fallthrough
CT: control target
= control target key end

     0   :  { %s4613_s0 = inlined_call_operand.vmem [shape: f32[2,256,4], index: 0, kind: input, shape index: {}]   ;;  %s4614_s1 = inlined_call_operand.vmem [shape: f32[4,8], index: 1, kind: input, shape index: {}]   ;;  %s4615_s2 = inlined_call_operand.vmem [shape: f32[1,8], index: 2, kind: input, shape index: {}]   ;;  %s4616_s3 = inlined_call_operand.vmem [shape: f32[8,8], index: 3, kind: input, shape index: {}]   ;;  %s4617_s4 = inlined_call_operand.vmem [shape: f32[1,8], index: 4, kind: input, shape index: {}]   ;;  %s4618_s5 = inlined_call_operand.vmem [shape: f32[8,8], index: 5, kind: input, shape index: {}]   ;;  %s4619_s6 = inlined_call_operand.vmem [shape: f32[1,8], index: 6, kind: input, shape index: {}]   ;;  %s4620_s7 = inlined_call_operand.vmem [shape: f32[9,8,8], index: 7, kind: input, shape index: {}]   ;;  %s4621_s8 = inlined_call_operand.vmem [shape: f32[1,8], index: 8, kind: input, shape index: {}]   ;;  %s4622_s9 = inlined_call_operand.hbm [shape: f32[2,16,16,16], index: 9, kind: output, shape index: {}]  }
   0x1   :  { %4630 = sst [smem:[#allocation13_spill]] %s4613_s0 }
   0x2   :  { %4631 = sst [smem:[#allocation14_spill]] %s4614_s1 }
   0x3   :  { %14 = vsyncpa [#allocation5], 0 }
   0x4   :  { %16 = vsyncpa [#allocation5 + $0x1], 0  ;;  %s3185_s30 = smov 0   ;;  %s3187_s10 = smov 0  }
   0x5   :  { %s3189_s11 = smov 0   ;;  %s3191_s12 = smov 0  }
   0x6   :  { %s3193_s13 = smov 0   ;;  %s3195_s14 = smov 0  }
   0x7   :  { %s3197_s15 = smov 0   ;;  %s3199_s16 = smov 0  }
   0x8 LB: > { %4632 = sst [smem:[#allocation7_spill]] %s3113_s14  ;;  %s2569_s17 = sadd.s32 4294967295, %s3121_s16   ;;  %s3121_s16 = sphi %s3199_s16, %s22_s16   ;;  %s3117_s15 = sphi %s3197_s15, %s4653_s15   ;;  %s3113_s14 = sphi %s3195_s14, %s4647_s14   ;;  %s3109_s13 = sphi %s3193_s13, %s4652_s13   ;;  %s3105_s12 = sphi %s3191_s12, %s4646_s12   ;;  %s3101_s11 = sphi %s3189_s11, %s4651_s11   ;;  %s3097_s10 = sphi %s3187_s10, %s4650_s10   ;;  %s3093_s30 = sphi %s3185_s30, %s4649_s30  }
   0x9   : > { %s2570_s18 = sadd.s32 4294967294, %s3121_s16   ;;  %s31_s19 = sadd.s32 1, %s3113_s14 }
   0xa   : > { %p32_p0 = scmp.ge.s32.totalorder %s31_s19, 2  ;;  %s34_s20 = sadd.s32 1, %s3117_s15 }
   0xb   : > { %p247_p1 = scmp.ne.s32.totalorder %s3101_s11, %s3097_s10  ;;  %p248_p2 = scmp.eq.s32.totalorder %s2569_s17, 3 }
   0xc   : > { %s4655_s19 = smov (%p32_p0, %s31_s19), 0  ;;  %s4657_s20 = smov (!%p32_p0, %s34_s20), %s3117_s15 }
   0xd   : > { %4633 = sst [smem:[#allocation8_spill]] %s4655_s19  ;;  %s233_s21 = ssub.s32 %s3113_s14, %s4655_s19 }
   0xe   : > { %p3236_p3 = por %p248_p2, %p247_p1  ;;  %p36_p4 = scmp.ge.s32.totalorder %s4657_s20, 2 }
   0xf   : > { %p253_p5 = scmp.ne.s32.totalorder %s3097_s10, %s3093_s30  ;;  %p254_p6 = scmp.eq.s32.totalorder %s2570_s18, 3 }
  0x10   : > { %p2573_p7 = scmp.ge.s32.totalorder %s3121_s16, 1  ;;  %s4659_s20 = smov (%p36_p4, %s4657_s20), 0 }
  0x11   : > { %4635 = sst [smem:[#allocation9_spill]] %s4659_s20  ;;  %p3245_p8 = por %p254_p6, %p253_p5 }
  0x12   : > { %p304_p9 = scmp.lt.s32.totalorder %s3121_s16, 5  ;;  %s232_s24 = ssub.s32 %s3117_s15, %s4659_s20 }
  0x13   : > { %s237_s25 = sadd.s32 1, %s3101_s11  ;;  %s234_s26 = sor.u32 %s233_s21, %s232_s24 }
  0x14   : > { %p305_p10 = pnand %p2573_p7, %p304_p9  ;;  %p235_p11 = scmp.eq.s32.totalorder %s234_s26, 0 }
  0x16   : > { %s3254_s27 = scalar_select %p235_p11, %s3101_s11, %s237_s25  }
  0x17   : > { %308 = sbr.rel (%p305_p10) target bundleno = 1480 (0x5c8), region = 56 }
  0x1e   : > { %s4626_s28 = sand.u32 1, %s3097_s10   ;;  %p340_p12 = scmp.lt.s32.totalorder %s3109_s13, 1 }
  0x1f   : > { %s2574_s29 = sshll.u32 %s4626_s28, 7  ;;  %s4637_s0 = sld [smem:[#allocation13_spill]] }
  0x20   : > { %s341_s17 = scalar_select %p340_p12, %s3109_s13, 1 }
  0x21   : > { %s3266_s21 = scalar_lea.vmem [#allocation4], %s2574_s29  ;;  %p2577_p13 = scmp.ne.s32.totalorder %s3105_s12, 0 }
  0x22   : > { %s2709_s18 = sshll.u32 %s341_s17, 8  ;;  %s4638_s1 = sld [smem:[#allocation14_spill]] (!%p2577_p13)  ;;  %vm487_vm0 = vcmask (!%p2577_p13), 1043456   ;;  %vm390_vm1 = vcmask (!%p2577_p13), 31744   ;;  %vm748_vm2 = vcmask (!%p2577_p13), 64512   ;;  %vm751_vm3 = vcmask (!%p2577_p13), 58368  }
  0x23   : > { %349 = sbr.rel (%p2577_p13) target bundleno = 732 (0x2dc), region = 60  ;;  %v3123_v33 = vmov (!%p2577_p13), 0.0   ;;  %v907_v34 = vld [vmem:[%s4616_s3] sm:$0xff] (!%p2577_p13)  ;;  %vm3124_vm4 = vmmov (!%p2577_p13), 0  }
  0x24   : > { %752 = vst.msk [vmem:[#allocation2 + $0x10] sm:$0x3] (!%p2577_p13), %vm751_vm3, %v3123_v33  ;;  %755 = vst.msk [vmem:[#allocation2 + $0x28] sm:$0x3] (!%p2577_p13), %vm751_vm3, %v3123_v33  ;;  %v3396_v35 = vld [vmem:[%s4615_s2] ss:$0 sm:$0xff] (!%p2577_p13) }
  0x25   : > { %s3264_s20 = scalar_lea.vmem %s4637_s0, %s2709_s18  ;;  %754 = vst.msk [vmem:[#allocation2 + $0x20] sm:$0xff] (!%p2577_p13), %vm748_vm2, %v3123_v33  ;;  %749 = vst.msk [vmem:[#allocation2] sm:$0xff] (!%p2577_p13), %vm748_vm2, %v3123_v33 }
  0x26   : > { %v350_v1 = vld [vmem:[%s3264_s20] sm:$0xff] (!%p2577_p13)  ;;  %v351_v2 = vld [vmem:[%s3264_s20 + $0x8] sm:$0xff] (!%p2577_p13)  ;;  %v352_v3 = vld [vmem:[%s3264_s20 + $0x10] sm:$0xff] (!%p2577_p13)  ;;  %803 = vst.msk [vmem:[#allocation2 + $0x1a8] sm:$0x3] (!%p2577_p13), %vm751_vm3, %v3123_v33 }
  0x27   : > { %2790 = vmatprep.mubr.msk.f32.mxu0 (!%p2577_p13), %vm390_vm1, %v350_v1  ;;  %v353_v4 = vld [vmem:[%s3264_s20 + $0x18] sm:$0xff] (!%p2577_p13)  ;;  %v354_v5 = vld [vmem:[%s3264_s20 + $0x20] sm:$0xff] (!%p2577_p13)  ;;  %v368_v6 = vld [vmem:[%s3264_s20 + $0x90] sm:$0xff] (!%p2577_p13)  ;;  %750 = vst.msk [vmem:[#allocation2 + $0x8] sm:$0xff] (!%p2577_p13), %vm748_vm2, %v3123_v33 }
  0x28   : > { %v382_v0 = vld [vmem:[%s4638_s1] sm:$0xf] (!%p2577_p13)  ;;  %v369_v7 = vld [vmem:[%s3264_s20 + $0x98] sm:$0xff] (!%p2577_p13)  ;;  %2817 = vmatprep.mubr.msk.f32.mxu1 (!%p2577_p13), %vm390_vm1, %v368_v6  ;;  %v355_v9 = vld [vmem:[%s3264_s20 + $0x28] sm:$0xff] (!%p2577_p13)  ;;  %753 = vst.msk [vmem:[#allocation2 + $0x18] sm:$0xff] (!%p2577_p13), %vm748_vm2, %v3123_v33 }
  0x29   : > { %2788 = vmatprep.subr.msk.mxu0 (!%p2577_p13), %vm487_vm0, %v382_v0  ;;  %2927 = vmatprep.subr.msk.mxu1 (!%p2577_p13), %vm487_vm0, %v382_v0  ;;  %v370_v8 = vld [vmem:[%s3264_s20 + $0xa0] sm:$0xff] (!%p2577_p13)  ;;  %v356_v10 = vld [vmem:[%s3264_s20 + $0x30] sm:$0xff] (!%p2577_p13)  ;;  %v371_v11 = vld [vmem:[%s3264_s20 + $0xa8] sm:$0xff] (!%p2577_p13)  ;;  %756 = vst.msk [vmem:[#allocation2 + $0x30] sm:$0xff] (!%p2577_p13), %vm748_vm2, %v3123_v33 }
  0x2a   : > { %2789 = vmatpush3.msk.msra.mxu0 %vm487_vm0, %v382_v0  ;;  %2928 = vmatpush3.msk.msra.mxu1 %vm487_vm0, %v382_v0  ;;  %v372_v12 = vld [vmem:[%s3264_s20 + $0xb0] sm:$0xff]  ;;  %v357_v13 = vld [vmem:[%s3264_s20 + $0x38] sm:$0xff]  ;;  %v358_v14 = vld [vmem:[%s3264_s20 + $0x40] sm:$0xff]  ;;  %757 = vst.msk [vmem:[#allocation2 + $0x38] sm:$0xff] %vm748_vm2, %v3123_v33 }
  0x2b   : > { %2791 = vmatmul.mubr.msk.f32.vlgmr.msra.gmra.mrb[0].mxu0 %vm390_vm1, %v351_v2  ;;  %2818 = vmatmul.mubr.msk.f32.vlgmr.msra.gmra.mrb[0].mxu1 %vm390_vm1, %v369_v7  ;;  %v373_v15 = vld [vmem:[%s3264_s20 + $0xb8] sm:$0xff]  ;;  %v374_v16 = vld [vmem:[%s3264_s20 + $0xc0] sm:$0xff]  ;;  %v359_v17 = vld [vmem:[%s3264_s20 + $0x48] sm:$0xff]  ;;  %758 = vst.msk [vmem:[#allocation2 + $0x40] sm:$0x3] %vm751_vm3, %v3123_v33 }
  0x2c   : > { %2793 = vmatprep.mubr.msk.f32.mxu0 %vm390_vm1, %v352_v3  ;;  %2820 = vmatprep.mubr.msk.f32.mxu1 %vm390_vm1, %v370_v8  ;;  %v360_v18 = vld [vmem:[%s3264_s20 + $0x50] sm:$0xff]  ;;  %v375_v19 = vld [vmem:[%s3264_s20 + $0xc8] sm:$0xff]  ;;  %v361_v21 = vld [vmem:[%s3264_s20 + $0x58] sm:$0xff]  ;;  %759 = vst.msk [vmem:[#allocation2 + $0x48] sm:$0xff] %vm748_vm2, %v3123_v33 }
  0x2d   : > { %v376_v20 = vld [vmem:[%s3264_s20 + $0xd0] sm:$0xff]  ;;  %v362_v22 = vld [vmem:[%s3264_s20 + $0x60] sm:$0xff]  ;;  %v377_v23 = vld [vmem:[%s3264_s20 + $0xd8] sm:$0xff]  ;;  %760 = vst.msk [vmem:[#allocation2 + $0x50] sm:$0xff] %vm748_vm2, %v3123_v33  ;;  %2838 = vmatprep.subr.mxu1 %v3123_v33 }
  0x2e   : > { %v378_v24 = vld [vmem:[%s3264_s20 + $0xe0] sm:$0xff]  ;;  %v363_v25 = vld [vmem:[%s3264_s20 + $0x68] sm:$0xff]  ;;  %v364_v26 = vld [vmem:[%s3264_s20 + $0x70] sm:$0xff]  ;;  %761 = vst.msk [vmem:[#allocation2 + $0x58] sm:$0x3] %vm751_vm3, %v3123_v33  ;;  %2839 = vmatpush3.msra.mxu1 %v907_v34 }
  0x2f   : > { %2794 = vmatmul.mubr.msk.f32.gmra.mrb[2].mxu0 %vm390_vm1, %v353_v4  ;;  %2821 = vmatmul.mubr.msk.f32.gmra.mrb[2].mxu1 %vm390_vm1, %v371_v11  ;;  %v379_v27 = vld [vmem:[%s3264_s20 + $0xe8] sm:$0xff]  ;;  %v380_v28 = vld [vmem:[%s3264_s20 + $0xf0] sm:$0xff]  ;;  %v365_v29 = vld [vmem:[%s3264_s20 + $0x78] sm:$0xff]  ;;  %762 = vst.msk [vmem:[#allocation2 + $0x60] sm:$0xff] %vm748_vm2, %v3123_v33 }
  0x30   : > { %2796 = vmatprep.mubr.msk.f32.mxu0 %vm390_vm1, %v354_v5  ;;  %2823 = vmatprep.mubr.msk.f32.mxu1 %vm390_vm1, %v372_v12  ;;  %v366_v30 = vld [vmem:[%s3264_s20 + $0x80] sm:$0xff]  ;;  %v381_v31 = vld [vmem:[%s3264_s20 + $0xf8] sm:$0xff]  ;;  %v367_v32 = vld [vmem:[%s3264_s20 + $0x88] sm:$0xff]  ;;  %763 = vst.msk [vmem:[#allocation2 + $0x68] sm:$0xff] %vm748_vm2, %v3123_v33 }
  0x31   : > { %764 = vst.msk [vmem:[#allocation2 + $0x70] sm:$0x3] %vm751_vm3, %v3123_v33  ;;  %767 = vst.msk [vmem:[#allocation2 + $0x88] sm:$0x3] %vm751_vm3, %v3123_v33 }
  0x32   : > { %765 = vst.msk [vmem:[#allocation2 + $0x78] sm:$0xff] %vm748_vm2, %v3123_v33  ;;  %766 = vst.msk [vmem:[#allocation2 + $0x80] sm:$0xff] %vm748_vm2, %v3123_v33 }
  0x33   : > { %2797 = vmatmul.mubr.msk.f32.gmra.mrb[4].mxu0 %vm390_vm1, %v355_v9  ;;  %2824 = vmatmul.mubr.msk.f32.gmra.mrb[4].mxu1 %vm390_vm1, %v373_v15  ;;  %768 = vst.msk [vmem:[#allocation2 + $0x90] sm:$0xff] %vm748_vm2, %v3123_v33  ;;  %769 = vst.msk [vmem:[#allocation2 + $0x98] sm:$0xff] %vm748_vm2, %v3123_v33 }
  0x34   : > { %2799 = vmatprep.mubr.msk.f32.mxu0 %vm390_vm1, %v356_v10  ;;  %2826 = vmatprep.mubr.msk.f32.mxu1 %vm390_vm1, %v374_v16  ;;  %770 = vst.msk [vmem:[#allocation2 + $0xa0] sm:$0x3] %vm751_vm3, %v3123_v33  ;;  %773 = vst.msk [vmem:[#allocation2 + $0xb8] sm:$0x3] %vm751_vm3, %v3123_v33 }
  0x35   : > { %771 = vst.msk [vmem:[#allocation2 + $0xa8] sm:$0xff] %vm748_vm2, %v3123_v33  ;;  %772 = vst.msk [vmem:[#allocation2 + $0xb0] sm:$0xff] %vm748_vm2, %v3123_v33 }
  0x36   : > { %774 = vst.msk [vmem:[#allocation2 + $0xc0] sm:$0xff] %vm748_vm2, %v3123_v33  ;;  %775 = vst.msk [vmem:[#allocation2 + $0xc8] sm:$0xff] %vm748_vm2, %v3123_v33 }
  0x37   : > { %2800 = vmatmul.mubr.msk.f32.gmra.mrb[6].mxu0 %vm390_vm1, %v357_v13  ;;  %2827 = vmatmul.mubr.msk.f32.gmra.mrb[6].mxu1 %vm390_vm1, %v375_v19  ;;  %776 = vst.msk [vmem:[#allocation2 + $0xd0] sm:$0x3] %vm751_vm3, %v3123_v33  ;;  %779 = vst.msk [vmem:[#allocation2 + $0xe8] sm:$0x3] %vm751_vm3, %v3123_v33 }
  0x38   : > { %2802 = vmatprep.mubr.msk.f32.mxu0 %vm390_vm1, %v358_v14  ;;  %2829 = vmatprep.mubr.msk.f32.mxu1 %vm390_vm1, %v376_v20  ;;  %777 = vst.msk [vmem:[#allocation2 + $0xd8] sm:$0xff] %vm748_vm2, %v3123_v33  ;;  %778 = vst.msk [vmem:[#allocation2 + $0xe0] sm:$0xff] %vm748_vm2, %v3123_v33 }
  0x39   : > { %780 = vst.msk [vmem:[#allocation2 + $0xf0] sm:$0xff] %vm748_vm2, %v3123_v33  ;;  %781 = vst.msk [vmem:[#allocation2 + $0xf8] sm:$0xff] %vm748_vm2, %v3123_v33 }
  0x3a   : > { %782 = vst.msk [vmem:[#allocation2 + $0x100] sm:$0x3] %vm751_vm3, %v3123_v33  ;;  %785 = vst.msk [vmem:[#allocation2 + $0x118] sm:$0x3] %vm751_vm3, %v3123_v33 }
  0x3b   : > { %2803 = vmatmul.mubr.msk.f32.gmra.mrb[8].mxu0 %vm390_vm1, %v359_v17  ;;  %2830 = vmatmul.mubr.msk.f32.gmra.mrb[8].mxu1 %vm390_vm1, %v377_v23  ;;  %783 = vst.msk [vmem:[#allocation2 + $0x108] sm:$0xff] %vm748_vm2, %v3123_v33  ;;  %784 = vst.msk [vmem:[#allocation2 + $0x110] sm:$0xff] %vm748_vm2, %v3123_v33 }
  0x3c   : > { %2805 = vmatprep.mubr.msk.f32.mxu0 %vm390_vm1, %v360_v18  ;;  %2832 = vmatprep.mubr.msk.f32.mxu1 %vm390_vm1, %v378_v24  ;;  %786 = vst.msk [vmem:[#allocation2 + $0x120] sm:$0xff] %vm748_vm2, %v3123_v33  ;;  %787 = vst.msk [vmem:[#allocation2 + $0x128] sm:$0xff] %vm748_vm2, %v3123_v33 }
  0x3d   : > { %788 = vst.msk [vmem:[#allocation2 + $0x130] sm:$0x3] %vm751_vm3, %v3123_v33  ;;  %791 = vst.msk [vmem:[#allocation2 + $0x148] sm:$0x3] %vm751_vm3, %v3123_v33 }
  0x3e   : > { %789 = vst.msk [vmem:[#allocation2 + $0x138] sm:$0xff] %vm748_vm2, %v3123_v33  ;;  %790 = vst.msk [vmem:[#allocation2 + $0x140] sm:$0xff] %vm748_vm2, %v3123_v33 }
  0x3f   : > { %2806 = vmatmul.mubr.msk.f32.gmra.mrb[10].mxu0 %vm390_vm1, %v361_v21  ;;  %2833 = vmatmul.mubr.msk.f32.gmra.mrb[10].mxu1 %vm390_vm1, %v379_v27  ;;  %792 = vst.msk [vmem:[#allocation2 + $0x150] sm:$0xff] %vm748_vm2, %v3123_v33  ;;  %793 = vst.msk [vmem:[#allocation2 + $0x158] sm:$0xff] %vm748_vm2, %v3123_v33 }
  0x40   : > { %2808 = vmatprep.mubr.msk.f32.mxu0 %vm390_vm1, %v362_v22  ;;  %2835 = vmatprep.mubr.msk.f32.mxu1 %vm390_vm1, %v380_v28  ;;  %794 = vst.msk [vmem:[#allocation2 + $0x160] sm:$0x3] %vm751_vm3, %v3123_v33  ;;  %797 = vst.msk [vmem:[#allocation2 + $0x178] sm:$0x3] %vm751_vm3, %v3123_v33 }
  0x41   : > { %795 = vst.msk [vmem:[#allocation2 + $0x168] sm:$0xff] %vm748_vm2, %v3123_v33  ;;  %796 = vst.msk [vmem:[#allocation2 + $0x170] sm:$0xff] %vm748_vm2, %v3123_v33 }
  0x42   : > { %798 = vst.msk [vmem:[#allocation2 + $0x180] sm:$0xff] %vm748_vm2, %v3123_v33  ;;  %799 = vst.msk [vmem:[#allocation2 + $0x188] sm:$0xff] %vm748_vm2, %v3123_v33 }
  0x43   : > { %2809 = vmatmul.mubr.msk.f32.gmra.mrb[12].mxu0 %vm390_vm1, %v363_v25  ;;  %2836 = vmatmul.mubr.msk.f32.gmra.mrb[12].mxu1 %vm390_vm1, %v381_v31  ;;  %800 = vst.msk [vmem:[#allocation2 + $0x190] sm:$0x3] %vm751_vm3, %v3123_v33 }
  0x44   : > { %2811 = vmatprep.mubr.msk.f32.mxu0 %vm390_vm1, %v364_v26  ;;  %801 = vst.msk [vmem:[#allocation2 + $0x198] sm:$0xff] %vm748_vm2, %v3123_v33  ;;  %802 = vst.msk [vmem:[#allocation2 + $0x1a0] sm:$0xff] %vm748_vm2, %v3123_v33  ;;  %2840 = vmatprep.mubr.msk.f32.mxu1 %vm3124_vm4, %v3123_v33 }
  0x47   : > { %2812 = vmatmul.mubr.msk.f32.gmra.mrb[14].mxu0 %vm390_vm1, %v365_v29 }
  0x48   : > { %2814 = vmatprep.mubr.msk.f32.mxu0 %vm390_vm1, %v366_v30 }
  0x4b   : > { %2815 = vmatmul.mubr.msk.f32.gmra.mrb[16].mxu0 %vm390_vm1, %v367_v32 }
  0xfe   : > { %v2792_v36 = vpop.f32.mrb[0].mxu0  ;;  %v2819_v46 = vpop.f32.mrb[0].mxu1 }
  0xff   : > { %v563_v37 = vadd.f32 %v2792_v36, %v3396_v35  ;;  %v557_v38 = vpop.f32.mrb[1].mxu0  ;;  %v3407_v49 = vadd.f32 %v2819_v46, %v3396_v35  ;;  %v647_v50 = vpop.f32.mrb[1].mxu1 }
 0x100   : > { %v558_v39 = vadd.f32 %v3396_v35, %v557_v38  ;;  %v3410_v53 = vadd.f32 %v3396_v35, %v647_v50 }
 0x101   : > { %v717_v40 = vmax.f32 %v563_v37, 0.0  ;;  %v735_v56 = vmax.f32 %v3407_v49, 0.0 }
 0x102   : > { %v716_v41 = vmax.f32 %v558_v39, 0.0  ;;  %v2795_v42 = vpop.f32.mrb[2].mxu0  ;;  %v734_v59 = vmax.f32 %v3410_v53, 0.0  ;;  %v2822_v60 = vpop.f32.mrb[2].mxu1 }
 0x103   : > { %806 = vst.msk [vmem:[#allocation2 + $0x21] sm:$0xff] %vm748_vm2, %v717_v40  ;;  %v838_v43 = vsel %vm748_vm2, %v717_v40, 0.0  ;;  %v573_v44 = vadd.f32 %v2795_v42, %v3396_v35  ;;  %v567_v45 = vpop.f32.mrb[3].mxu0  ;;  %824 = vst.msk [vmem:[#allocation2 + $0xf9] sm:$0xff] %vm748_vm2, %v735_v56  ;;  %v3423_v63 = vadd.f32 %v2822_v60, %v3396_v35  ;;  %v657_v0 = vpop.f32.mrb[3].mxu1 }
 0x104   : > { %805 = vst.msk [vmem:[#allocation2 + $0x19] sm:$0xff] %vm748_vm2, %v716_v41  ;;  %v837_v47 = vsel %vm748_vm2, %v716_v41, 0.0  ;;  %v568_v48 = vadd.f32 %v3396_v35, %v567_v45  ;;  %823 = vst.msk [vmem:[#allocation2 + $0xf1] sm:$0xff] %vm748_vm2, %v734_v59  ;;  %v3429_v3 = vadd.f32 %v3396_v35, %v657_v0 }
 0x105   : > { %v839_v51 = vadd.f32 %v838_v43, %v837_v47  ;;  %v719_v52 = vmax.f32 %v573_v44, 0.0  ;;  %v737_v7 = vmax.f32 %v3423_v63, 0.0 }
 0x106   : > { %v718_v54 = vmax.f32 %v568_v48, 0.0  ;;  %v2798_v55 = vpop.f32.mrb[4].mxu0  ;;  %v736_v11 = vmax.f32 %v3429_v3, 0.0  ;;  %v2825_v12 = vpop.f32.mrb[4].mxu1 }
 0x107   : > { %808 = vst.msk [vmem:[#allocation2 + $0x39] sm:$0xff] %vm748_vm2, %v719_v52  ;;  %v583_v57 = vadd.f32 %v2798_v55, %v3396_v35  ;;  %v577_v58 = vpop.f32.mrb[5].mxu0  ;;  %v842_v4 = vsel %vm748_vm2, %v719_v52, 0.0  ;;  %826 = vst.msk [vmem:[#allocation2 + $0x111] sm:$0xff] %vm748_vm2, %v737_v7  ;;  %v3443_v15 = vadd.f32 %v2825_v12, %v3396_v35  ;;  %v667_v16 = vpop.f32.mrb[5].mxu1 }
 0x108   : > { %807 = vst.msk [vmem:[#allocation2 + $0x31] sm:$0xff] %vm748_vm2, %v718_v54  ;;  %v840_v61 = vsel %vm748_vm2, %v718_v54, 0.0  ;;  %v578_v62 = vadd.f32 %v3396_v35, %v577_v58  ;;  %825 = vst.msk [vmem:[#allocation2 + $0x109] sm:$0xff] %vm748_vm2, %v736_v11  ;;  %v3449_v19 = vadd.f32 %v3396_v35, %v667_v16 }
 0x109   : > { %v841_v1 = vadd.f32 %v840_v61, %v839_v51  ;;  %v721_v2 = vmax.f32 %v583_v57, 0.0  ;;  %v739_v23 = vmax.f32 %v3443_v15, 0.0 }
 0x10a   : > { %v720_v5 = vmax.f32 %v578_v62, 0.0  ;;  %v2801_v6 = vpop.f32.mrb[6].mxu0  ;;  %v738_v27 = vmax.f32 %v3449_v19, 0.0  ;;  %v2828_v28 = vpop.f32.mrb[6].mxu1 }
 0x10b   : > { %810 = vst.msk [vmem:[#allocation2 + $0x51] sm:$0xff] %vm748_vm2, %v721_v2  ;;  %v843_v8 = vadd.f32 %v842_v4, %v841_v1  ;;  %v593_v9 = vadd.f32 %v2801_v6, %v3396_v35  ;;  %v587_v10 = vpop.f32.mrb[7].mxu0  ;;  %v846_v20 = vsel %vm748_vm2, %v721_v2, 0.0  ;;  %828 = vst.msk [vmem:[#allocation2 + $0x129] sm:$0xff] %vm748_vm2, %v739_v23  ;;  %v3463_v31 = vadd.f32 %v2828_v28, %v3396_v35  ;;  %v677_v32 = vpop.f32.mrb[7].mxu1 }
 0x10c   : > { %809 = vst.msk [vmem:[#allocation2 + $0x49] sm:$0xff] %vm748_vm2, %v720_v5  ;;  %v844_v13 = vsel %vm748_vm2, %v720_v5, 0.0  ;;  %v588_v14 = vadd.f32 %v3396_v35, %v587_v10  ;;  %827 = vst.msk [vmem:[#allocation2 + $0x121] sm:$0xff] %vm748_vm2, %v738_v27  ;;  %v3469_v36 = vadd.f32 %v3396_v35, %v677_v32  ;;  %v880_v53 = vsel %vm748_vm2, %v738_v27, 0.0 }
 0x10d   : > { %v845_v17 = vadd.f32 %v844_v13, %v843_v8  ;;  %v723_v18 = vmax.f32 %v593_v9, 0.0  ;;  %v741_v40 = vmax.f32 %v3463_v31, 0.0  ;;  %v882_v49 = vsel %vm748_vm2, %v739_v23, 0.0 }
 0x10e   : > { %v722_v21 = vmax.f32 %v588_v14, 0.0  ;;  %v2804_v22 = vpop.f32.mrb[8].mxu0  ;;  %v740_v44 = vmax.f32 %v3469_v36, 0.0  ;;  %v2831_v45 = vpop.f32.mrb[8].mxu1 }
 0x10f   : > { %812 = vst.msk [vmem:[#allocation2 + $0x69] sm:$0xff] %vm748_vm2, %v723_v18  ;;  %v847_v24 = vadd.f32 %v846_v20, %v845_v17  ;;  %v603_v25 = vadd.f32 %v2804_v22, %v3396_v35  ;;  %v597_v26 = vpop.f32.mrb[9].mxu0  ;;  %v850_v37 = vsel %vm748_vm2, %v723_v18, 0.0  ;;  %830 = vst.msk [vmem:[#allocation2 + $0x141] sm:$0xff] %vm748_vm2, %v741_v40  ;;  %v3483_v48 = vadd.f32 %v2831_v45, %v3396_v35  ;;  %v687_v50 = vpop.f32.mrb[9].mxu1 }
 0x110   : > { %811 = vst.msk [vmem:[#allocation2 + $0x61] sm:$0xff] %vm748_vm2, %v722_v21  ;;  %v848_v29 = vsel %vm748_vm2, %v722_v21, 0.0  ;;  %v598_v30 = vadd.f32 %v3396_v35, %v597_v26  ;;  %829 = vst.msk [vmem:[#allocation2 + $0x139] sm:$0xff] %vm748_vm2, %v740_v44  ;;  %v3489_v54 = vadd.f32 %v3396_v35, %v687_v50  ;;  %v886_v63 = vsel %vm748_vm2, %v741_v40, 0.0 }
 0x111   : > { %v849_v33 = vadd.f32 %v848_v29, %v847_v24  ;;  %v725_v34 = vmax.f32 %v603_v25, 0.0  ;;  %v743_v60 = vmax.f32 %v3483_v48, 0.0 }
 0x112   : > { %v724_v38 = vmax.f32 %v598_v30, 0.0  ;;  %v2807_v39 = vpop.f32.mrb[10].mxu0  ;;  %v742_v1 = vmax.f32 %v3489_v54, 0.0  ;;  %v2834_v2 = vpop.f32.mrb[10].mxu1 }
 0x113   : > { %814 = vst.msk [vmem:[#allocation2 + $0x81] sm:$0xff] %vm748_vm2, %v725_v34  ;;  %v851_v41 = vadd.f32 %v850_v37, %v849_v33  ;;  %v613_v42 = vadd.f32 %v2807_v39, %v3396_v35  ;;  %v607_v43 = vpop.f32.mrb[11].mxu0  ;;  %v854_v55 = vsel %vm748_vm2, %v725_v34, 0.0  ;;  %832 = vst.msk [vmem:[#allocation2 + $0x159] sm:$0xff] %vm748_vm2, %v743_v60  ;;  %v3503_v6 = vadd.f32 %v2834_v2, %v3396_v35  ;;  %v697_v8 = vpop.f32.mrb[11].mxu1 }
 0x114   : > { %813 = vst.msk [vmem:[#allocation2 + $0x79] sm:$0xff] %vm748_vm2, %v724_v38  ;;  %v852_v46 = vsel %vm748_vm2, %v724_v38, 0.0  ;;  %v608_v47 = vadd.f32 %v3396_v35, %v607_v43  ;;  %831 = vst.msk [vmem:[#allocation2 + $0x151] sm:$0xff] %vm748_vm2, %v742_v1  ;;  %v3509_v12 = vadd.f32 %v3396_v35, %v697_v8  ;;  %v890_v15 = vsel %vm748_vm2, %v743_v60, 0.0 }
 0x115   : > { %v853_v51 = vadd.f32 %v852_v46, %v851_v41  ;;  %v727_v52 = vmax.f32 %v613_v42, 0.0  ;;  %v745_v17 = vmax.f32 %v3503_v6, 0.0  ;;  %v908_v6 = vld [vmem:[%s4617_s4] sm:$0x1] }
 0x116   : > { %v726_v57 = vmax.f32 %v608_v47, 0.0  ;;  %v2810_v58 = vpop.f32.mrb[12].mxu0  ;;  %v744_v22 = vmax.f32 %v3509_v12, 0.0  ;;  %v2837_v24 = vpop.f32.mrb[12].mxu1 }
 0x117   : > { %816 = vst.msk [vmem:[#allocation2 + $0x99] sm:$0xff] %vm748_vm2, %v727_v52  ;;  %v855_v61 = vadd.f32 %v854_v55, %v853_v51  ;;  %v623_v62 = vadd.f32 %v2810_v58, %v3396_v35  ;;  %v617_v0 = vpop.f32.mrb[13].mxu0  ;;  %v858_v13 = vsel %vm748_vm2, %v727_v52, 0.0  ;;  %834 = vst.msk [vmem:[#allocation2 + $0x171] sm:$0xff] %vm748_vm2, %v745_v17  ;;  %v713_v28 = vadd.f32 %v2837_v24, %v3396_v35  ;;  %v707_v29 = vpop.f32.mrb[13].mxu1 }
 0x118   : > { %815 = vst.msk [vmem:[#allocation2 + $0x91] sm:$0xff] %vm748_vm2, %v726_v57  ;;  %v856_v4 = vsel %vm748_vm2, %v726_v57, 0.0  ;;  %v618_v5 = vadd.f32 %v3396_v35, %v617_v0  ;;  %833 = vst.msk [vmem:[#allocation2 + $0x169] sm:$0xff] %vm748_vm2, %v744_v22  ;;  %v708_v33 = vadd.f32 %v3396_v35, %v707_v29  ;;  %v892_v23 = vsel %vm748_vm2, %v744_v22, 0.0 }
 0x119   : > { %v857_v9 = vadd.f32 %v856_v4, %v855_v61  ;;  %v729_v10 = vmax.f32 %v623_v62, 0.0  ;;  %v747_v39 = vmax.f32 %v713_v28, 0.0  ;;  %v874_v4 = vsel %vm748_vm2, %v735_v56, 0.0 }
 0x11a   : > { %v728_v14 = vmax.f32 %v618_v5, 0.0  ;;  %v2813_v16 = vpop.f32.mrb[14].mxu0  ;;  %v746_v45 = vmax.f32 %v708_v33, 0.0  ;;  %v876_v5 = vsel %vm748_vm2, %v736_v11, 0.0  ;;  %v884_v56 = vsel %vm748_vm2, %v740_v44, 0.0 }
 0x11b   : > { %818 = vst.msk [vmem:[#allocation2 + $0xb1] sm:$0xff] %vm748_vm2, %v729_v10  ;;  %v859_v18 = vadd.f32 %v858_v13, %v857_v9  ;;  %v633_v20 = vadd.f32 %v2813_v16, %v3396_v35  ;;  %v627_v21 = vpop.f32.mrb[15].mxu0  ;;  %v862_v34 = vsel %vm748_vm2, %v729_v10, 0.0  ;;  %836 = vst.msk [vmem:[#allocation2 + $0x189] sm:$0xff] %vm748_vm2, %v747_v39  ;;  %v878_v10 = vsel %vm748_vm2, %v737_v7, 0.0 }
 0x11c   : > { %817 = vst.msk [vmem:[#allocation2 + $0xa9] sm:$0xff] %vm748_vm2, %v728_v14  ;;  %v860_v25 = vsel %vm748_vm2, %v728_v14, 0.0  ;;  %v628_v26 = vadd.f32 %v3396_v35, %v627_v21  ;;  %835 = vst.msk [vmem:[#allocation2 + $0x181] sm:$0xff] %vm748_vm2, %v746_v45  ;;  %v888_v7 = vsel %vm748_vm2, %v742_v1, 0.0  ;;  %v894_v31 = vsel %vm748_vm2, %v745_v17, 0.0 }
 0x11d   : > { %v861_v30 = vadd.f32 %v860_v25, %v859_v18  ;;  %v731_v32 = vmax.f32 %v633_v20, 0.0  ;;  %v896_v40 = vsel %vm748_vm2, %v746_v45, 0.0  ;;  %v898_v1 = vsel %vm748_vm2, %v747_v39, 0.0  ;;  %v1003_v45 = vld [vmem:[%s4620_s7 + $0x10] sm:$0xff] }
 0x11e   : > { %v730_v37 = vmax.f32 %v628_v26, 0.0  ;;  %v2816_v38 = vpop.f32.mrb[16].mxu0 }
 0x11f   : > { %820 = vst.msk [vmem:[#allocation2 + $0xc9] sm:$0xff] %vm748_vm2, %v731_v32  ;;  %v863_v41 = vadd.f32 %v862_v34, %v861_v30  ;;  %v643_v42 = vadd.f32 %v2816_v38, %v3396_v35  ;;  %v637_v43 = vpop.f32.mrb[17].mxu0  ;;  %v866_v52 = vsel %vm748_vm2, %v731_v32, 0.0  ;;  %v988_v30 = vlaneseq }
 0x120   : > { %819 = vst.msk [vmem:[#allocation2 + $0xc1] sm:$0xff] %vm748_vm2, %v730_v37  ;;  %v864_v46 = vsel %vm748_vm2, %v730_v37, 0.0  ;;  %v638_v47 = vadd.f32 %v3396_v35, %v637_v43  ;;  %v872_v35 = vsel %vm748_vm2, %v734_v59, 0.0  ;;  %v1002_v43 = vld [vmem:[%s4620_s7 + $0x8] sm:$0xff] }
 0x121   : > { %v865_v50 = vadd.f32 %v864_v46, %v863_v41  ;;  %v733_v51 = vmax.f32 %v643_v42, 0.0  ;;  %v989_v32 = vshrl.u32 %v988_v30, 7  ;;  %v991_v33 = vand.u32 127, %v988_v30  ;;  %v1001_v42 = vld [vmem:[%s4620_s7] sm:$0xff]  ;;  %v1004_v46 = vld [vmem:[%s4620_s7 + $0x18] sm:$0xff] }
 0x122   : > { %v732_v55 = vmax.f32 %v638_v47, 0.0  ;;  %v1005_v47 = vld [vmem:[%s4620_s7 + $0x20] sm:$0xff] }
 0x123   : > { %822 = vst.msk [vmem:[#allocation2 + $0xe1] sm:$0xff] %vm748_vm2, %v733_v51  ;;  %v867_v57 = vadd.f32 %v866_v52, %v865_v50  ;;  %v870_v62 = vsel %vm748_vm2, %v733_v51, 0.0  ;;  %v995_v34 = vsub.s32 0, %v989_v32  ;;  %vm992_vm5 = vcmp.eq.s32.totalorder %v989_v32, %v991_v33  ;;  %v1006_v50 = vld [vmem:[%s4620_s7 + $0x28] sm:$0xff]  ;;  %v1007_v51 = vld [vmem:[%s4620_s7 + $0x30] sm:$0xff]  ;;  %v1008_v52 = vld [vmem:[%s4620_s7 + $0x38] sm:$0xff] }
 0x124   : > { %821 = vst.msk [vmem:[#allocation2 + $0xd9] sm:$0xff] %vm748_vm2, %v732_v55  ;;  %v868_v58 = vsel %vm748_vm2, %v732_v55, 0.0 }
 0x125   : > { %v869_v61 = vadd.f32 %v868_v58, %v867_v57  ;;  %v1009_v57 = vld [vmem:[%s4620_s7 + $0x40] sm:$0xff] }
 0x127   : > { %v871_v0 = vadd.f32 %v870_v62, %v869_v61 }
 0x129   : > { %v873_v2 = vadd.f32 %v872_v35, %v871_v0 }
 0x12b   : > { %v875_v8 = vadd.f32 %v874_v4, %v873_v2 }
 0x12d   : > { %v877_v9 = vadd.f32 %v876_v5, %v875_v8 }
 0x12f   : > { %v879_v59 = vadd.f32 %v878_v10, %v877_v9 }
 0x131   : > { %v881_v12 = vadd.f32 %v880_v53, %v879_v59 }
 0x133   : > { %v883_v3 = vadd.f32 %v882_v49, %v881_v12 }
 0x135   : > { %v885_v11 = vadd.f32 %v884_v56, %v883_v3 }
 0x137   : > { %v887_v19 = vadd.f32 %v886_v63, %v885_v11 }
 0x139   : > { %v889_v27 = vadd.f32 %v888_v7, %v887_v19 }
 0x13b   : > { %v891_v36 = vadd.f32 %v890_v15, %v889_v27 }
 0x13d   : > { %v893_v44 = vadd.f32 %v892_v23, %v891_v36 }
 0x13f   : > { %v895_v13 = vadd.f32 %v894_v31, %v893_v44 }
 0x141   : > { %v897_v54 = vadd.f32 %v896_v40, %v895_v13 }
 0x143   : > { %v899_v14 = vadd.f32 %v898_v1, %v897_v54 }
 0x145   : > { %v900_v16 = vrot.slane %v899_v14, 4 }
 0x147   : > { %v901_v18 = vadd.f32 %v900_v16, %v899_v14 }
 0x149   : > { %v902_v48 = vrot.slane %v901_v18, 2 }
 0x14b   : > { %v903_v20 = vadd.f32 %v902_v48, %v901_v18 }
 0x14d   : > { %v904_v60 = vrot.slane %v903_v20, 1 }
 0x14f   : > { %v905_v21 = vadd.f32 %v904_v60, %v903_v20 }
 0x151   : > { %v906_v22 = vmul.f32 0.00390625, %v905_v21 }
 0x153   : > { %2841 = vmatmul.mubr.msk.f32.vlgmr.msra.gmra.mrb[14].mxu1 %vm748_vm2, %v906_v22 }
 0x226   : > { %v978_v17 = vpop.f32.mrb[14].mxu1 }
 0x227   : > { %v979_v24 = vadd.f32 %v978_v17, %v908_v6  ;;  %v2842_v25 = vpop.f32.mrb[15].mxu1 }
 0x229   : > { %v2613_v26 = vmul.f32 -1.442695, %v979_v24 }
 0x22b   : > { %3021 = vpow2.f32 %v2613_v26 }
 0x235   : > { %v3022_v28 = vpop.eup %3021 }
 0x236   : > { %v985_v29 = vadd.f32 1.0, %v3022_v28 }
 0x238   : > { %3023 = vrcp.f32 %v985_v29 }
 0x242   : > { %v3024_v37 = vpop.eup %3023 }
 0x243   : > { %v996_v38 = vrot.slane %v3024_v37, %v995_v34 }
 0x245   : > { %v997_v39 = vsel %vm992_vm5, %v996_v38, 0.0 }
 0x246   : > { %v998_v41 = vsel %vm748_vm2, %v997_v39, 0.0 }
 0x247   : > { %999 = vadd.xlane.f32.xlu0 %v998_v41 }
 0x2d4   : > { %v1000_v55 = vpop.xlane.xlu0 %999 }
 0x2d5   : > { %v1010_v58 = vmul.f32 %v1001_v42, %v1000_v55  ;;  %v1011_v61 = vmul.f32 %v1002_v43, %v1000_v55  ;;  %v1012_v62 = vmul.f32 %v1003_v45, %v1000_v55  ;;  %v1013_v35 = vmul.f32 %v1004_v46, %v1000_v55 }
 0x2d6   : > { %v1014_v0 = vmul.f32 %v1005_v47, %v1000_v55  ;;  %v1015_v2 = vmul.f32 %v1006_v50, %v1000_v55  ;;  %v1016_v4 = vmul.f32 %v1007_v51, %v1000_v55  ;;  %v1017_v5 = vmul.f32 %v1008_v52, %v1000_v55 }
 0x2d7   : > { %v1018_v8 = vmul.f32 %v1009_v57, %v1000_v55  ;;  %1019 = vst.msk [vmem:[#allocation3] sm:$0xff] %vm748_vm2, %v1010_v58  ;;  %1020 = vst.msk [vmem:[#allocation3 + $0x8] sm:$0xff] %vm748_vm2, %v1011_v61 }
 0x2d8   : > { %1021 = vst.msk [vmem:[#allocation3 + $0x10] sm:$0xff] %vm748_vm2, %v1012_v62  ;;  %1022 = vst.msk [vmem:[#allocation3 + $0x18] sm:$0xff] %vm748_vm2, %v1013_v35 }
 0x2d9   : > { %1023 = vst.msk [vmem:[#allocation3 + $0x20] sm:$0xff] %vm748_vm2, %v1014_v0  ;;  %1024 = vst.msk [vmem:[#allocation3 + $0x28] sm:$0xff] %vm748_vm2, %v1015_v2 }
 0x2da   : > { %1025 = vst.msk [vmem:[#allocation3 + $0x30] sm:$0xff] %vm748_vm2, %v1016_v4  ;;  %1026 = vst.msk [vmem:[#allocation3 + $0x38] sm:$0xff] %vm748_vm2, %v1017_v5 }
 0x2db   : > { %1027 = vst.msk [vmem:[#allocation3 + $0x40] sm:$0xff] %vm748_vm2, %v1018_v8 }
 0x2dc PF: > { %s2615_s0 = smul.u32 192, %s3105_s12  ;;  %vm1488_vm6 = vcmask 1045504   ;;  %vm1133_vm7 = vcmask 1046528   ;;  %s3125_s28 = smov 16   ;;  %vm1182_vm8 = vcmask 64512   ;;  %vm2025_vm9 = vcmask 130048  }
 0x2dd   : > { %s3126_s26 = smov 8   ;;  %s3127_s29 = smov 24   ;;  %vm2042_vm10 = vcmask 195584   ;;  %vm2059_vm11 = vcmask 261120   ;;  %vm2076_vm12 = vcmask 326656   ;;  %vm2093_vm13 = vcmask 392192  }
 0x2de   : > { %s3616_s1 = scalar_lea.vmem [#allocation2], %s2615_s0  ;;  %s3128_s17 = smov 32   ;;  %v2144_v22 = vld [vmem:[#allocation3] sm:$0xff]  ;;  %v2145_v6 = vld [vmem:[#allocation3 + $0x8] sm:$0xff]  ;;  %vm2110_vm14 = vcmask 457728   ;;  %vm2127_vm15 = vcmask 523264  }
 0x2df   : > { %s3129_s18 = smov 40   ;;  %v2146_v25 = vld [vmem:[#allocation3 + $0x10] sm:$0xff]  ;;  %v2147_v26 = vld [vmem:[#allocation3 + $0x18] sm:$0xff]  ;;  %v3698_v33 = vpack.c.bf16 %v2145_v6, %v2144_v22  ;;  %s3130_s24 = smov 48   ;;  %vm2160_vm0 = vcmask 588800  }
 0x2e0   : > { %v3704_v37 = vpack.c.bf16 %v2147_v26, %v2146_v25  ;;  %v2148_v38 = vld [vmem:[#allocation3 + $0x20] sm:$0xff]  ;;  %v2149_v39 = vld [vmem:[#allocation3 + $0x28] sm:$0xff]  ;;  %s3131_s25 = smov 56   ;;  %s3132_s14 = smov 64  }
 0x2e1   : > { %2929 = vmatprep.subr.bf16.mxu1 %v3698_v33  ;;  %v3720_v46 = vpack.c.bf16 %v2149_v39, %v2148_v38  ;;  %v2150_v47 = vld [vmem:[#allocation3 + $0x30] sm:$0xff]  ;;  %v2151_v50 = vld [vmem:[#allocation3 + $0x38] sm:$0xff]  ;;  %s4645_s20 = sand.u32 1, %s3097_s10  }
 0x2e2   : > { %2934 = vmatpush3.bf16.msra.mxu1 %v3698_v33  ;;  %v3731_v55 = vpack.c.bf16 %v2151_v50, %v2150_v47  ;;  %v3742_v35 = vld [vmem:[#allocation3 + $0x40] sm:$0xff]  ;;  %v3823_v50 = vld [vmem:[%s3616_s1 + $0x98] sm:$0xff]  ;;  %s4560_s0 = scalar_lea.sflag [#allocation5], %s4645_s20 }
 0x2e3   : > { %v3619_v9 = vld [vmem:[%s3616_s1 + $0x30] sm:$0xff]  ;;  %v3622_v10 = vld [vmem:[%s3616_s1 + $0x38] sm:$0xff]  ;;  %v1039_v53 = vld [vmem:[%s3616_s1 + $0x40] sm:$0x3]  ;;  %2930 = vmatprep.subr.bf16.mxu1 %v3704_v37 }
 0x2e4   : > { %v1499_v59 = vrot.slane %v3619_v9, 2  ;;  %v3627_v12 = vrot.slane %v3622_v10, 2  ;;  %v1410_v49 = vrot.slane %v3619_v9, 1  ;;  %v3631_v56 = vrot.slane %v3622_v10, 1  ;;  %v3650_v15 = vld [vmem:[%s3616_s1 + $0x50] sm:$0xff]  ;;  %v3653_v23 = vld [vmem:[%s3616_s1 + $0x48] sm:$0xff] }
 0x2e5   : > { %v1502_v3 = vrot.slane %v1039_v53, 2  ;;  %v1413_v11 = vrot.slane %v1039_v53, 1  ;;  %v1145_v36 = vrot.slane %v3650_v15, 1  ;;  %v1144_v44 = vrot.slane %v3653_v23, 1  ;;  %v2626_v31 = vld [vmem:[%s3616_s1 + $0x58] sm:$0x3] }
 0x2e6   : > { %v3635_v63 = vsel %vm1488_vm6, %v1499_v59, %v3627_v12  ;;  %v3639_v7 = vsel %vm1133_vm7, %v1410_v49, %v3631_v56  ;;  %v1684_v40 = vrot.slane %v3650_v15, 2  ;;  %v1683_v13 = vrot.slane %v3653_v23, 2  ;;  %v1042_v14 = vld [vmem:[%s3616_s1 + $0x58] sm:$0x3]  ;;  %v3683_v21 = vld [vmem:[%s3616_s1 + $0x20] sm:$0xff]  ;;  %v3701_v34 = vld [vmem:[%s3616_s1 + $0x68] sm:$0xff]  ;;  %2935 = vmatpush3.bf16.msra.mxu1 %v3704_v37 }
 0x2e7   : > { %1537 = vrot.lane.b32.xlu1 %v3635_v63, %s3125_s28  ;;  %1448 = vrot.lane.b32.xlu0 %v3639_v7, %s3126_s26  ;;  %v1503_v19 = vsel %vm1488_vm6, %v3627_v12, %v1502_v3  ;;  %v1414_v27 = vsel %vm1133_vm7, %v3631_v56, %v1413_v11  ;;  %v3667_v54 = vsel %vm1133_vm7, %v1144_v44, %v1145_v36  ;;  %v1147_v1 = vrot.slane %v2626_v31, 1  ;;  %v3686_v17 = vld [vmem:[%s3616_s1 + $0x18] sm:$0xff]  ;;  %v3692_v28 = vld [vmem:[%s3616_s1 + $0x60] sm:$0xff] }
 0x2e8   : > { %v1685_v16 = vsel %vm1488_vm6, %v1683_v13, %v1684_v40  ;;  %v1418_v48 = vrot.slane %v1042_v14, 1  ;;  %v1686_v60 = vrot.slane %v2626_v31, 2  ;;  %v1134_v24 = vrot.slane %v3686_v17, 1  ;;  %v2652_v52 = vld [vmem:[%s3616_s1 + $0x70] sm:$0x3]  ;;  %2931 = vmatprep.subr.bf16.mxu1 %v3720_v46  ;;  %v3774_v44 = vld [vmem:[%s3616_s1 + $0x80] sm:$0xff] }
 0x2e9   : > { %v3676_v18 = vsel %vm1133_vm7, %v1145_v36, %v1147_v1  ;;  %v1507_v30 = vrot.slane %v1042_v14, 2  ;;  %v3696_v32 = vrot.slane %v3683_v21, 1  ;;  %v1843_v42 = vrot.slane %v3692_v28, 1  ;;  %v2629_v62 = vld [vmem:[%s3616_s1 + $0x70] sm:$0x3]  ;;  %4639 = vst [vmem:[#allocation10_spill] sm:$0xff] %v3774_v44 }
 0x2ea   : > { %v1419_v20 = vsel %vm1133_vm7, %v1145_v36, %v1418_v48  ;;  %v1687_v29 = vsel %vm1488_vm6, %v1684_v40, %v1686_v60  ;;  %v1844_v45 = vrot.slane %v3701_v34, 1  ;;  %v1931_v57 = vrot.slane %v3692_v28, 2  ;;  %2936 = vmatpush3.bf16.msra.mxu1 %v3720_v46  ;;  %v1045_v53 = vld [vmem:[%s3616_s1 + $0x70] sm:$0x3]  ;;  %v2655_v14 = vld [vmem:[%s3616_s1 + $0x88] sm:$0x3] }
 0x2eb   : > { %1539 = vrot.lane.b32.xlu1 %v1503_v19, %s3125_s28  ;;  %1450 = vrot.lane.b32.xlu0 %v1414_v27, %s3126_s26  ;;  %v3711_v41 = vsel %vm1133_vm7, %v1134_v24, %v3696_v32  ;;  %v1508_v43 = vsel %vm1488_vm6, %v1684_v40, %v1507_v30  ;;  %v1932_v58 = vrot.slane %v3701_v34, 2  ;;  %v1846_v61 = vrot.slane %v2652_v52, 1  ;;  %v3770_v19 = vld [vmem:[%s3616_s1 + $0x78] sm:$0xff]  ;;  %v2632_v60 = vld [vmem:[%s3616_s1 + $0x88] sm:$0x3] }
 0x2ec   : > { %2845 = vmatprep.mubr.msk.f32.mxu0 %vm1182_vm8, %v3711_v41  ;;  %v3726_v51 = vsel %vm1133_vm7, %v1843_v42, %v1844_v45  ;;  %2932 = vmatprep.subr.bf16.mxu1 %v3731_v55  ;;  %v1152_v4 = vrot.slane %v2629_v62, 1  ;;  %v1934_v8 = vrot.slane %v2652_v52, 2  ;;  %v1423_v49 = vrot.slane %v1045_v53, 1 }
 0x2ed   : > { %v1933_v0 = vsel %vm1488_vm6, %v1931_v57, %v1932_v58  ;;  %v1847_v2 = vsel %vm1133_vm7, %v1844_v45, %v1846_v61  ;;  %v1691_v11 = vrot.slane %v2629_v62, 2  ;;  %v1512_v36 = vrot.slane %v1045_v53, 2  ;;  %v2658_v62 = vld [vmem:[%s3616_s1 + $0xa0] sm:$0x3]  ;;  %v3848_v53 = vld [vmem:[%s3616_s1 + $0x8] sm:$0xff] }
 0x2ee   : > { %2937 = vmatpush3.bf16.msra.mxu1 %v3731_v55  ;;  %v3755_v5 = vsel %vm1133_vm7, %v1844_v45, %v1152_v4  ;;  %v1935_v59 = vsel %vm1488_vm6, %v1932_v58, %v1934_v8  ;;  %v1424_v3 = vsel %vm1133_vm7, %v1844_v45, %v1423_v49  ;;  %v1848_v31 = vrot.slane %v3770_v19, 1  ;;  %v3845_v8 = vld [vmem:[%s3616_s1] sm:$0xff] }
 0x2ef   : > { %1587 = vrot.lane.b32.xlu1 %v3650_v15, %s3127_s29  ;;  %1585 = vrot.lane.b32.xlu0 %v3653_v23, %s3127_s29  ;;  %v1692_v27 = vsel %vm1488_vm6, %v1932_v58, %v1691_v11  ;;  %v1513_v40 = vsel %vm1488_vm6, %v1932_v58, %v1512_v36  ;;  %v1849_v13 = vrot.slane %v3774_v44, 1  ;;  %v1937_v48 = vrot.slane %v3774_v44, 2 }
 0x2f0   : > { %2933 = vmatprep.subr.mxu1 %v3742_v35  ;;  %v1157_v24 = vrot.slane %v2632_v60, 1  ;;  %v1939_v26 = vrot.slane %v2655_v14, 2  ;;  %v1696_v42 = vrot.slane %v2632_v60, 2  ;;  %v1854_v58 = vrot.slane %v3823_v50, 1 }
 0x2f1   : > { %v3786_v1 = vsel %vm1133_vm7, %v1848_v31, %v1849_v13  ;;  %v1856_v4 = vrot.slane %v2658_v62, 1  ;;  %v1401_v11 = vrot.slane %v3848_v53, 1 }
 0x2f2   : > { %2938 = vmatpush3.msra.mxu1 %v3742_v35  ;;  %v3805_v25 = vsel %vm1133_vm7, %v1849_v13, %v1157_v24  ;;  %v1940_v30 = vsel %vm1488_vm6, %v1937_v48, %v1939_v26  ;;  %v1697_v45 = vsel %vm1488_vm6, %v1937_v48, %v1696_v42 }
 0x2f3   : > { %1452 = vrot.lane.b32.xlu1 %v3667_v54, %s3126_s26  ;;  %1633 = vrot.lane.b32.xlu0 %v3667_v54, %s3128_s17  ;;  %v1857_v49 = vsel %vm1133_vm7, %v1854_v58, %v1856_v4 }
 0x2f7   : > { %1721 = vrot.lane.b32.xlu1 %v1685_v16, %s3129_s18  ;;  %1635 = vrot.lane.b32.xlu0 %v3676_v18, %s3128_s17 }
 0x2fb   : > { %1541 = vrot.lane.b32.xlu1 %v1685_v16, %s3125_s28  ;;  %1454 = vrot.lane.b32.xlu0 %v1419_v20, %s3126_s26  ;;  %v1936_v16 = vrot.slane %v3770_v19, 2  ;;  %v1851_v20 = vrot.slane %v2655_v14, 1 }
 0x2fd   : > { %v1938_v22 = vsel %vm1488_vm6, %v1936_v16, %v1937_v48  ;;  %v1852_v6 = vsel %vm1133_vm7, %v1849_v13, %v1851_v20  ;;  %v1944_v16 = vrot.slane %v2658_v62, 2  ;;  %v1489_v20 = vrot.slane %v3845_v8, 2 }
 0x2ff   : > { %1785 = vrot.lane.b32.xlu1 %v3692_v28, %s3130_s24  ;;  %1723 = vrot.lane.b32.xlu0 %v1687_v29, %s3129_s18  ;;  %v1048_v29 = vld [vmem:[%s3616_s1 + $0x88] sm:$0x3] }
 0x300   : > { %v1428_v38 = vrot.slane %v1048_v29, 1  ;;  %v1517_v47 = vrot.slane %v1048_v29, 2 }
 0x302   : > { %v1429_v39 = vsel %vm1133_vm7, %v1849_v13, %v1428_v38  ;;  %v1518_v57 = vsel %vm1488_vm6, %v1937_v48, %v1517_v47  ;;  %v1051_v48 = vld [vmem:[%s3616_s1 + $0xa0] sm:$0x3] }
 0x303   : > { %1589 = vrot.lane.b32.xlu1 %v3692_v28, %s3127_s29  ;;  %1543 = vrot.lane.b32.xlu0 %v1508_v43, %s3125_s28  ;;  %v3819_v43 = vld [vmem:[%s3616_s1 + $0x90] sm:$0xff]  ;;  %v1433_v24 = vrot.slane %v1051_v48, 1  ;;  %v1522_v4 = vrot.slane %v1051_v48, 2 }
 0x304   : > { %v1853_v52 = vrot.slane %v3819_v43, 1 }
 0x305   : > { %v1434_v38 = vsel %vm1133_vm7, %v1854_v58, %v1433_v24 }
 0x306   : > { %v3835_v61 = vsel %vm1133_vm7, %v1853_v52, %v1854_v58 }
 0x307   : > { %1881 = vrot.lane.b32.xlu1 %v3726_v51, %s3131_s25  ;;  %1787 = vrot.lane.b32.xlu0 %v3701_v34, %s3130_s24 }
 0x30b   : > { %1637 = vrot.lane.b32.xlu1 %v3726_v51, %s3128_s17  ;;  %1591 = vrot.lane.b32.xlu0 %v3701_v34, %s3127_s29 }
 0x30f   : > { %1969 = vrot.lane.b32.xlu1 %v1933_v0, %s3132_s14  ;;  %1883 = vrot.lane.b32.xlu0 %v1847_v2, %s3131_s25  ;;  %v1942_v2 = vrot.slane %v3823_v50, 2 }
 0x313   : > { %1639 = vrot.lane.b32.xlu1 %v3755_v5, %s3128_s17  ;;  %1456 = vrot.lane.b32.xlu0 %v3726_v51, %s3126_s26 }
 0x317   : > { %1971 = vrot.lane.b32.xlu1 %v1935_v59, %s3132_s14  ;;  %1725 = vrot.lane.b32.xlu0 %v1933_v0, %s3129_s18 }
 0x31b   : > { %1545 = vrot.lane.b32.xlu1 %v1933_v0, %s3125_s28  ;;  %1458 = vrot.lane.b32.xlu0 %v1424_v3, %s3126_s26  ;;  %v1941_v0 = vrot.slane %v3819_v43, 2  ;;  %v1400_v3 = vrot.slane %v3845_v8, 1 }
 0x31d   : > { %v1943_v59 = vsel %vm1488_vm6, %v1941_v0, %v1942_v2  ;;  %v1402_v36 = vsel %vm1133_vm7, %v1400_v3, %v1401_v11  ;;  %v3894_v0 = vld [vmem:[%s3616_s1 + $0xa8] sm:$0xff] }
 0x31e   : > { %4640 = vst [vmem:[#allocation11_spill] sm:$0xff] %v3894_v0 }
 0x31f   : > { %1789 = vrot.lane.b32.xlu1 %v3770_v19, %s3130_s24  ;;  %1727 = vrot.lane.b32.xlu0 %v1692_v27, %s3129_s18  ;;  %v2635_v27 = vld [vmem:[%s3616_s1 + $0xa0] sm:$0x3] }
 0x320   : > { %v1162_v31 = vrot.slane %v2635_v27, 1 }
 0x322   : > { %v3867_v13 = vsel %vm1133_vm7, %v1854_v58, %v1162_v31  ;;  %v1858_v31 = vrot.slane %v3894_v0, 1 }
 0x323   : > { %1593 = vrot.lane.b32.xlu1 %v3770_v19, %s3127_s29  ;;  %1547 = vrot.lane.b32.xlu0 %v1513_v40, %s3125_s28  ;;  %v1033_v40 = vld [vmem:[%s3616_s1 + $0x10] sm:$0x3] }
 0x324   : > { %v1403_v14 = vrot.slane %v1033_v40, 1  ;;  %v1492_v52 = vrot.slane %v1033_v40, 2 }
 0x326   : > { %v1404_v60 = vsel %vm1133_vm7, %v1401_v11, %v1403_v14  ;;  %v1523_v11 = vsel %vm1488_vm6, %v1942_v2, %v1522_v4  ;;  %v3951_v4 = vld [vmem:[%s3616_s1 + $0x28] sm:$0x3] }
 0x327   : > { %1885 = vrot.lane.b32.xlu1 %v3786_v1, %s3131_s25  ;;  %1791 = vrot.lane.b32.xlu0 %v3774_v44, %s3130_s24 }
 0x32b   : > { %1641 = vrot.lane.b32.xlu1 %v3786_v1, %s3128_s17  ;;  %1595 = vrot.lane.b32.xlu0 %v3774_v44, %s3127_s29  ;;  %v3969_v44 = vld [vmem:[%s3616_s1 + $0xb8] sm:$0x3] }
 0x32f   : > { %1973 = vrot.lane.b32.xlu1 %v1938_v22, %s3132_s14  ;;  %1887 = vrot.lane.b32.xlu0 %v1852_v6, %s3131_s25  ;;  %v1490_v6 = vrot.slane %v3848_v53, 2 }
 0x331   : > { %v1493_v58 = vsel %vm1488_vm6, %v1490_v6, %v1492_v52 }
 0x333   : > { %1643 = vrot.lane.b32.xlu1 %v3805_v25, %s3128_s17  ;;  %1460 = vrot.lane.b32.xlu0 %v3786_v1, %s3126_s26 }
 0x337   : > { %1975 = vrot.lane.b32.xlu1 %v1940_v30, %s3132_s14  ;;  %1729 = vrot.lane.b32.xlu0 %v1938_v22, %s3129_s18  ;;  %v1491_v30 = vsel %vm1488_vm6, %v1489_v20, %v1490_v6 }
 0x33b   : > { %1549 = vrot.lane.b32.xlu1 %v1938_v22, %s3125_s28  ;;  %1462 = vrot.lane.b32.xlu0 %v1429_v39, %s3126_s26  ;;  %v1945_v22 = vsel %vm1488_vm6, %v1942_v2, %v1944_v16  ;;  %v1701_v39 = vrot.slane %v2635_v27, 2 }
 0x33d   : > { %v1702_v47 = vsel %vm1488_vm6, %v1942_v2, %v1701_v39 }
 0x33f   : > { %1793 = vrot.lane.b32.xlu1 %v3819_v43, %s3130_s24  ;;  %1731 = vrot.lane.b32.xlu0 %v1697_v45, %s3129_s18 }
 0x343   : > { %1597 = vrot.lane.b32.xlu1 %v3819_v43, %s3127_s29  ;;  %1551 = vrot.lane.b32.xlu0 %v1518_v57, %s3125_s28 }
 0x347   : > { %1889 = vrot.lane.b32.xlu1 %v3835_v61, %s3131_s25  ;;  %1795 = vrot.lane.b32.xlu0 %v3823_v50, %s3130_s24 }
 0x34b   : > { %1645 = vrot.lane.b32.xlu1 %v3835_v61, %s3128_s17  ;;  %1599 = vrot.lane.b32.xlu0 %v3823_v50, %s3127_s29 }
 0x34f   : > { %1977 = vrot.lane.b32.xlu1 %v1943_v59, %s3132_s14  ;;  %1891 = vrot.lane.b32.xlu0 %v1857_v49, %s3131_s25 }
 0x353   : > { %1464 = vrot.lane.b32.xlu1 %v3835_v61, %s3126_s26  ;;  %1440 = vrot.lane.b32.xlu0 %v1402_v36, %s3126_s26 }
 0x357   : > { %1733 = vrot.lane.b32.xlu1 %v1943_v59, %s3129_s18  ;;  %1647 = vrot.lane.b32.xlu0 %v3867_v13, %s3128_s17 }
 0x359   : > { %v1538_v26 = vpop.permute.xlu1 %1537  ;;  %v1449_v29 = vpop.permute.xlu0 %1448 }
 0x35b   : > { %1442 = vrot.lane.b32.xlu1 %v1404_v60, %s3126_s26  ;;  %1979 = vrot.lane.b32.xlu0 %v1945_v22, %s3132_s14  ;;  %v3927_v60 = vld [vmem:[%s3616_s1 + $0xb8] sm:$0x3] }
 0x35c   : > { %v1861_v22 = vrot.slane %v3927_v60, 1 }
 0x35d   : > { %v3881_v42 = vpop.permute.xlu1 %1539  ;;  %v3883_v45 = vpop.permute.xlu0 %1450 }
 0x35f   : > { %1529 = vrot.lane.b32.xlu1 %v1491_v30, %s3125_s28  ;;  %1466 = vrot.lane.b32.xlu0 %v1434_v38, %s3126_s26  ;;  %v1946_v30 = vrot.slane %v3894_v0, 2 }
 0x361   : > { %v3888_v57 = vpop.permute.xlu1 %1587  ;;  %v1586_v62 = vpop.permute.xlu0 %1585 }
 0x363   : > { %1735 = vrot.lane.b32.xlu1 %v1702_v47, %s3129_s18  ;;  %1553 = vrot.lane.b32.xlu0 %v1943_v59, %s3125_s28  ;;  %v3905_v59 = vld [vmem:[%s3616_s1 + $0xb0] sm:$0xff]  ;;  %v2013_v47 = vsel %vm1182_vm8, %v3619_v9, %v1449_v29  ;;  %v1137_v29 = vrot.slane %v3951_v4, 1 }
 0x364   : > { %4641 = vst [vmem:[#allocation12_spill] sm:$0xff] %v3905_v59  ;;  %v3912_v40 = vrot.slane %v3905_v59, 1  ;;  %v3944_v38 = vrot.slane %v3905_v59, 2 }
 0x365   : > { %v3896_v49 = vpop.permute.xlu1 %1452  ;;  %v1634_v3 = vpop.permute.xlu0 %1633 }
 0x366   : > { %v3924_v2 = vsel %vm1133_vm7, %v1858_v31, %v3912_v40  ;;  %v1862_v39 = vsel %vm1133_vm7, %v3912_v40, %v1861_v22  ;;  %v3959_v31 = vsel %vm1488_vm6, %v1946_v30, %v3944_v38  ;;  %v3979_v30 = vrot.slane %v3683_v21, 2 }
 0x367   : > { %1531 = vrot.lane.b32.xlu1 %v1493_v58, %s3125_s28  ;;  %1797 = vrot.lane.b32.xlu0 %v3894_v0, %s3130_s24 }
 0x369   : > { %v1722_v27 = vpop.permute.xlu1 %1721  ;;  %v3902_v36 = vpop.permute.xlu0 %1635 }
 0x36b   : > { %1577 = vrot.lane.b32.xlu1 %v3686_v17, %s3127_s29  ;;  %1555 = vrot.lane.b32.xlu0 %v1523_v11, %s3125_s28  ;;  %v2030_v11 = vsel %vm2025_vm9, %v2013_v47, %v1538_v26  ;;  %v1673_v47 = vrot.slane %v3686_v17, 2  ;;  %v2014_v17 = vsel %vm1182_vm8, %v3622_v10, %v3883_v45 }
 0x36c   : > { %v2047_v22 = vsel %vm2042_vm10, %v2030_v11, %v1586_v62 }
 0x36d   : > { %v3914_v14 = vpop.permute.xlu1 %1541  ;;  %v3916_v16 = vpop.permute.xlu0 %1454  ;;  %v1675_v45 = vsel %vm1488_vm6, %v1673_v47, %v3979_v30 }
 0x36f   : > { %1799 = vrot.lane.b32.xlu1 %v3905_v59, %s3130_s24  ;;  %1601 = vrot.lane.b32.xlu0 %v3894_v0, %s3127_s29 }
 0x371   : > { %v1786_v48 = vpop.permute.xlu1 %1785  ;;  %v1724_v20 = vpop.permute.xlu0 %1723 }
 0x373   : > { %1579 = vrot.lane.b32.xlu1 %v3683_v21, %s3127_s29  ;;  %1893 = vrot.lane.b32.xlu0 %v3924_v2, %s3131_s25  ;;  %v2031_v21 = vsel %vm2025_vm9, %v2014_v17, %v3881_v42  ;;  %v4009_v42 = vld [vmem:[%s3616_s1 + $0xb8] sm:$0x3] }
 0x375   : > { %v3934_v6 = vpop.permute.xlu1 %1589  ;;  %v3936_v24 = vpop.permute.xlu0 %1543 }
 0x377   : > { %1625 = vrot.lane.b32.xlu1 %v3711_v41, %s3128_s17  ;;  %1603 = vrot.lane.b32.xlu0 %v3905_v59, %s3127_s29 }
 0x379   : > { %v1882_v52 = vpop.permute.xlu1 %1881  ;;  %v1788_v58 = vpop.permute.xlu0 %1787 }
 0x37b   : > { %1895 = vrot.lane.b32.xlu1 %v1862_v39, %s3131_s25  ;;  %1649 = vrot.lane.b32.xlu0 %v3924_v2, %s3128_s17  ;;  %v2064_v39 = vsel %vm2059_vm11, %v2047_v22, %v1634_v3  ;;  %v1138_v3 = vsel %vm1133_vm7, %v3696_v32, %v1137_v29  ;;  %v1167_v22 = vrot.slane %v3969_v44, 1  ;;  %v2048_v29 = vsel %vm2042_vm10, %v2031_v21, %v3888_v57 }
 0x37c   : > { %v2081_v26 = vsel %vm2076_vm12, %v2064_v39, %v1722_v27  ;;  %v2065_v17 = vsel %vm2059_vm11, %v2048_v29, %v3902_v36 }
 0x37d   : > { %v3963_v59 = vpop.permute.xlu1 %1637  ;;  %v3965_v0 = vpop.permute.xlu0 %1591  ;;  %v2098_v62 = vsel %vm2093_vm13, %v2081_v26, %v1786_v48 }
 0x37f   : > { %1444 = vrot.lane.b32.xlu1 %v3711_v41, %s3126_s26  ;;  %1981 = vrot.lane.b32.xlu0 %v3959_v31, %s3132_s14  ;;  %v2115_v41 = vsel %vm2110_vm14, %v2098_v62, %v1882_v52  ;;  %v1949_v52 = vrot.slane %v3927_v60, 2  ;;  %v4006_v62 = vsel %vm1133_vm7, %v3912_v40, %v1167_v22  ;;  %v2082_v60 = vsel %vm2076_vm12, %v2065_v17, %v1724_v20  ;;  %v4040_v17 = vld [vmem:[%s3616_s1 + $0x40] sm:$0x3] }
 0x380   : > { %v2099_v57 = vsel %vm2093_vm13, %v2082_v60, %v1788_v58  ;;  %v1174_v60 = vld [vmem:[%s4618_s5] sm:$0xff] }
 0x381   : > { %v1970_v27 = vpop.permute.xlu1 %1969  ;;  %v1884_v11 = vpop.permute.xlu0 %1883  ;;  %v1950_v47 = vsel %vm1488_vm6, %v3944_v38, %v1949_v52  ;;  %2843 = vmatprep.subr.mxu0 %v1174_v60 }
 0x382   : > { %v2132_v48 = vsel %vm2127_vm15, %v2115_v41, %v1970_v27  ;;  %v4014_v41 = vld [vmem:[%s3616_s1 + $0x28] sm:$0x3]  ;;  %v1438_v27 = vrot.slane %v4009_v42, 1  ;;  %v2116_v22 = vsel %vm2110_vm14, %v2099_v57, %v1884_v11  ;;  %v1706_v57 = vrot.slane %v3969_v44, 2  ;;  %2844 = vmatpush3.msra.mxu0 %v1174_v60 }
 0x383   : > { %2893 = vmatprep.mubr.msk.f32.mxu1 %vm2160_vm0, %v2132_v48  ;;  %1627 = vrot.lane.b32.xlu1 %v1138_v3, %s3128_s17  ;;  %v1408_v21 = vrot.slane %v4014_v41, 1 }
 0x384   : > { %1468 = vrot.lane.b32.xlu0 %v3924_v2, %s3126_s26  ;;  %v1439_v58 = vsel %vm1133_vm7, %v3912_v40, %v1438_v27  ;;  %v1676_v27 = vrot.slane %v3951_v4, 2  ;;  %2846 = vmatmul.mubr.msk.f32.vlgmr.msra.gmra.mrb[0].mxu0 %vm1182_vm8, %v1138_v3  ;;  %v1707_v44 = vsel %vm1488_vm6, %v3944_v38, %v1706_v57  ;;  %v2015_v4 = vsel %vm1182_vm8, %v3653_v23, %v3896_v49 }
 0x385   : > { %v4000_v39 = vpop.permute.xlu1 %1639  ;;  %v4002_v26 = vpop.permute.xlu0 %1456  ;;  %v1409_v11 = vsel %vm1133_vm7, %v3696_v32, %v1408_v21  ;;  %v1142_v32 = vrot.slane %v4040_v17, 1  ;;  %2912 = vmatprep.subr.bf16.mxu0 %v3698_v33  ;;  %2848 = vmatprep.mubr.msk.f32.mxu0 %vm1182_vm8, %v3639_v7  ;;  %v2032_v23 = vsel %vm2025_vm9, %v2015_v4, %v3914_v14  ;;  %v1527_v49 = vrot.slane %v4009_v42, 2 }
 0x386   : > { %2914 = vmatpush3.bf16.msra.mxu0 %v3698_v33  ;;  %v4085_v33 = vld [vmem:[%s3616_s1 + $0xc0] sm:$0xff] }
 0x387   : > { %1713 = vrot.lane.b32.xlu1 %v1675_v45, %s3129_s18  ;;  %2916 = vmatprep.subr.bf16.mxu0 %v3704_v37 }
 0x388   : > { %1651 = vrot.lane.b32.xlu0 %v4006_v62, %s3128_s17 }
 0x389   : > { %v1972_v36 = vpop.permute.xlu1 %1971  ;;  %v1726_v48 = vpop.permute.xlu0 %1725 }
 0x38a   : > { %v2133_v20 = vsel %vm2127_vm15, %v2116_v22, %v1972_v36  ;;  %v4073_v36 = vsel %vm1133_vm7, %v3631_v56, %v1142_v32  ;;  %2918 = vmatpush3.bf16.msra.mxu0 %v3704_v37  ;;  %v1528_v37 = vsel %vm1488_vm6, %v3944_v38, %v1527_v49  ;;  %v2646_v32 = vld [vmem:[%s3616_s1 + $0x40] sm:$0x3] }
 0x38b   : > { %2894 = vmatmul.mubr.msk.f32.vlgmr.msra.gmra.mrb[0].mxu1 %vm2160_vm0, %v2133_v20  ;;  %1983 = vrot.lane.b32.xlu1 %v1950_v47, %s3132_s14  ;;  %v1497_v20 = vrot.slane %v4014_v41, 2  ;;  %v2663_v41 = vld [vmem:[%s3616_s1 + $0xc8] sm:$0xff] }
 0x38c   : > { %1737 = vrot.lane.b32.xlu0 %v3959_v31, %s3129_s18  ;;  %2849 = vmatmul.mubr.msk.f32.gmra.mrb[2].mxu0 %vm1182_vm8, %v4073_v36  ;;  %v1952_v49 = vrot.slane %v2663_v41, 2 }
 0x38d   : > { %v4033_v52 = vpop.permute.xlu1 %1545  ;;  %v4035_v29 = vpop.permute.xlu0 %1458  ;;  %2851 = vmatprep.mubr.msk.f32.mxu0 %vm1182_vm8, %v3667_v54  ;;  %2920 = vmatprep.subr.bf16.mxu0 %v3720_v46  ;;  %v2049_v54 = vsel %vm2042_vm10, %v2032_v23, %v3934_v6  ;;  %v1498_v6 = vsel %vm1488_vm6, %v3979_v30, %v1497_v20  ;;  %v1951_v23 = vrot.slane %v4085_v33, 2 }
 0x38e   : > { %2922 = vmatpush3.bf16.msra.mxu0 %v3720_v46 }
 0x38f   : > { %1470 = vrot.lane.b32.xlu1 %v1439_v58, %s3126_s26  ;;  %2924 = vmatprep.subr.bf16.mxu0 %v3731_v55  ;;  %v1864_v58 = vrot.slane %v2663_v41, 1 }
 0x390   : > { %1446 = vrot.lane.b32.xlu0 %v1409_v11, %s3126_s26  ;;  %2852 = vmatmul.mubr.msk.f32.gmra.mrb[4].mxu0 %vm1182_vm8, %v3676_v18  ;;  %v4151_v11 = vld [vmem:[%s3616_s1 + $0xd0] sm:$0x3] }
 0x391   : > { %v1790_v40 = vpop.permute.xlu1 %1789  ;;  %v4048_v47 = vpop.permute.xlu0 %1727  ;;  %2854 = vmatprep.mubr.msk.f32.mxu0 %vm1182_vm8, %v3726_v51  ;;  %v2066_v51 = vsel %vm2059_vm11, %v2049_v54, %v3963_v59  ;;  %v1172_v60 = vrot.slane %v4151_v11, 1  ;;  %v1953_v54 = vsel %vm1488_vm6, %v1951_v23, %v1952_v49  ;;  %v2649_v23 = vld [vmem:[%s3616_s1 + $0x58] sm:$0x3] }
 0x392   : > { %v2083_v38 = vsel %vm2076_vm12, %v2066_v51, %v1726_v48  ;;  %2926 = vmatpush3.bf16.msra.mxu0 %v3731_v55  ;;  %v1863_v48 = vrot.slane %v4085_v33, 1 }
 0x393   : > { %1557 = vrot.lane.b32.xlu1 %v3959_v31, %s3125_s28  ;;  %v1677_v31 = vsel %vm1488_vm6, %v3979_v30, %v1676_v27  ;;  %v2100_v46 = vsel %vm2093_vm13, %v2083_v38, %v1790_v40  ;;  %2885 = vmatprep.subr.mxu0 %v3742_v35  ;;  %v1173_v27 = vsel %vm1133_vm7, %v1864_v58, %v1172_v60 }
 0x394   : > { %1533 = vrot.lane.b32.xlu0 %v1675_v45, %s3125_s28  ;;  %2855 = vmatmul.mubr.msk.f32.gmra.mrb[6].mxu0 %vm1182_vm8, %v3755_v5 }
 0x395   : > { %v4065_v3 = vpop.permute.xlu1 %1593  ;;  %v4067_v22 = vpop.permute.xlu0 %1547  ;;  %2857 = vmatprep.mubr.msk.f32.mxu0 %vm1182_vm8, %v3786_v1  ;;  %v2016_v1 = vsel %vm1182_vm8, %v3650_v15, %v3916_v16 }
 0x396   : > { %v2033_v55 = vsel %vm2025_vm9, %v2016_v1, %v3936_v24  ;;  %2886 = vmatpush3.msra.mxu0 %v3742_v35  ;;  %v1865_v35 = vsel %vm1133_vm7, %v1863_v48, %v1864_v58  ;;  %v1681_v48 = vrot.slane %v4040_v17, 2 }
 0x397   : > { %1739 = vrot.lane.b32.xlu1 %v1707_v44, %s3129_s18  ;;  %v2050_v15 = vsel %vm2042_vm10, %v2033_v55, %v3965_v0 }
 0x398   : > { %1715 = vrot.lane.b32.xlu0 %v1677_v31, %s3129_s18  ;;  %2858 = vmatmul.mubr.msk.f32.gmra.mrb[8].mxu0 %vm1182_vm8, %v3805_v25  ;;  %v2067_v24 = vsel %vm2059_vm11, %v2050_v15, %v4000_v39  ;;  %v1836_v31 = vrot.slane %v2646_v32, 1 }
 0x399   : > { %v1886_v45 = vpop.permute.xlu1 %1885  ;;  %v1792_v21 = vpop.permute.xlu0 %1791  ;;  %2860 = vmatprep.mubr.msk.f32.mxu0 %vm1182_vm8, %v3835_v61 }
 0x39a   : > { %v2117_v30 = vsel %vm2110_vm14, %v2100_v46, %v1886_v45 }
 0x39b   : > { %1801 = vrot.lane.b32.xlu1 %v4085_v33, %s3130_s24 }
 0x39c   : > { %1777 = vrot.lane.b32.xlu0 %v3619_v9, %s3130_s24  ;;  %2861 = vmatmul.mubr.msk.f32.gmra.mrb[10].mxu0 %vm1182_vm8, %v3867_v13 }
 0x39d   : > { %v4104_v14 = vpop.permute.xlu1 %1641  ;;  %v4106_v18 = vpop.permute.xlu0 %1595  ;;  %2863 = vmatprep.mubr.msk.f32.mxu0 %vm1182_vm8, %v3924_v2 }
 0x39f   : > { %1559 = vrot.lane.b32.xlu1 %v1528_v37, %s3125_s28 }
 0x3a0   : > { %1535 = vrot.lane.b32.xlu0 %v1498_v6, %s3125_s28  ;;  %2864 = vmatmul.mubr.msk.f32.gmra.mrb[12].mxu0 %vm1182_vm8, %v4006_v62  ;;  %s3133_s28 = smov [#allocation4]  }
 0x3a1   : > { %v1974_v42 = vpop.permute.xlu1 %1973  ;;  %v1888_v59 = vpop.permute.xlu0 %1887  ;;  %2866 = vmatprep.mubr.msk.f32.mxu0 %vm1182_vm8, %v1865_v35 }
 0x3a2   : > { %v2134_v5 = vsel %vm2127_vm15, %v2117_v30, %v1974_v42 }
 0x3a3   : > { %2896 = vmatprep.mubr.msk.f32.mxu1 %vm2160_vm0, %v2134_v5  ;;  %1605 = vrot.lane.b32.xlu1 %v4085_v33, %s3127_s29  ;;  %v1711_v5 = vrot.slane %v4151_v11, 2 }
 0x3a4   : > { %1581 = vrot.lane.b32.xlu0 %v3619_v9, %s3127_s29  ;;  %v2084_v9 = vsel %vm2076_vm12, %v2067_v24, %v4048_v47  ;;  %v2664_v47 = vld [vmem:[%s3616_s1 + $0xd0] sm:$0x3]  ;;  %2867 = vmatmul.mubr.msk.f32.gmra.mrb[14].mxu0 %vm1182_vm8, %v1173_v27 }
 0x3a5   : > { %v4143_v25 = vpop.permute.xlu1 %1643  ;;  %v4145_v16 = vpop.permute.xlu0 %1460  ;;  %v2101_v61 = vsel %vm2093_vm13, %v2084_v9, %v1792_v21  ;;  %v1866_v62 = vrot.slane %v2664_v47, 1  ;;  %v1712_v15 = vsel %vm1488_vm6, %v1952_v49, %v1711_v5 }
 0x3a6   : > { %v2118_v0 = vsel %vm2110_vm14, %v2101_v61, %v1888_v59  ;;  %v1924_v59 = vrot.slane %v2646_v32, 2 }
 0x3a7   : > { %1803 = vrot.lane.b32.xlu1 %v2663_v41, %s3130_s24  ;;  %v1867_v45 = vsel %vm1133_vm7, %v1864_v58, %v1866_v62  ;;  %v2018_v58 = vsel %vm1182_vm8, %v3701_v34, %v4035_v29  ;;  %v1682_v34 = vsel %vm1488_vm6, %v3627_v12, %v1681_v48 }
 0x3a8   : > { %1779 = vrot.lane.b32.xlu0 %v3622_v10, %s3130_s24  ;;  %v1925_v55 = vsel %vm1488_vm6, %v3627_v12, %v1924_v59  ;;  %v2666_v12 = vld [vmem:[%s3616_s1 + $0xe0] sm:$0xff] }
 0x3a9   : > { %v1976_v13 = vpop.permute.xlu1 %1975  ;;  %v1730_v39 = vpop.permute.xlu0 %1729 }
 0x3aa   : > { %v2135_v57 = vsel %vm2127_vm15, %v2118_v0, %v1976_v13  ;;  %v2647_v13 = vld [vmem:[%s3616_s1 + $0x48] sm:$0xff] }
 0x3ab   : > { %2897 = vmatmul.mubr.msk.f32.gmra.mrb[2].mxu1 %vm2160_vm0, %v2135_v57  ;;  %1897 = vrot.lane.b32.xlu1 %v1865_v35, %s3131_s25  ;;  %v1869_v57 = vrot.slane %v2666_v12, 1 }
 0x3ac   : > { %1873 = vrot.lane.b32.xlu0 %v3639_v7, %s3131_s25 }
 0x3ad   : > { %v4174_v2 = vpop.permute.xlu1 %1549  ;;  %v4176_v40 = vpop.permute.xlu0 %1462 }
 0x3af   : > { %1607 = vrot.lane.b32.xlu1 %v2663_v41, %s3127_s29 }
 0x3b0   : > { %1583 = vrot.lane.b32.xlu0 %v3622_v10, %s3127_s29  ;;  %v1837_v10 = vsel %vm1133_vm7, %v3631_v56, %v1836_v31  ;;  %s3031_s29 = sshll.u32 %s3133_s28, 4  ;;  %s3032_s29 = int_to_ptr.vmem [resolvable:$false] %s3031_s29 }
 0x3b1   : > { %v1794_v44 = vpop.permute.xlu1 %1793  ;;  %v1732_v4 = vpop.permute.xlu0 %1731 }
 0x3b3   : > { %1653 = vrot.lane.b32.xlu1 %v1865_v35, %s3128_s17 }
 0x3b4   : > { %1629 = vrot.lane.b32.xlu0 %v3639_v7, %s3128_s17  ;;  %v2017_v7 = vsel %vm1182_vm8, %v3692_v28, %v4002_v26 }
 0x3b5   : > { %v4190_v21 = vpop.permute.xlu1 %1597  ;;  %v4192_v20 = vpop.permute.xlu0 %1551  ;;  %v2034_v6 = vsel %vm2025_vm9, %v2017_v7, %v4033_v52  ;;  %v1954_v52 = vrot.slane %v2664_v47, 2 }
 0x3b6   : > { %v2051_v56 = vsel %vm2042_vm10, %v2034_v6, %v4065_v3 }
 0x3b7   : > { %1899 = vrot.lane.b32.xlu1 %v1867_v45, %s3131_s25  ;;  %v2068_v46 = vsel %vm2059_vm11, %v2051_v56, %v4104_v14  ;;  %v1955_v14 = vsel %vm1488_vm6, %v1952_v49, %v1954_v52  ;;  %v1957_v56 = vrot.slane %v2666_v12, 2 }
 0x3b8   : > { %1875 = vrot.lane.b32.xlu0 %v1837_v10, %s3131_s25  ;;  %v2085_v28 = vsel %vm2076_vm12, %v2068_v46, %v1730_v39 }
 0x3b9   : > { %v1890_v33 = vpop.permute.xlu1 %1889  ;;  %v1796_v37 = vpop.permute.xlu0 %1795  ;;  %v2102_v26 = vsel %vm2093_vm13, %v2085_v28, %v1794_v44  ;;  %v1926_v28 = vrot.slane %v2647_v13, 2 }
 0x3ba   : > { %v2119_v30 = vsel %vm2110_vm14, %v2102_v26, %v1890_v33 }
 0x3bb   : > { %1985 = vrot.lane.b32.xlu1 %v1953_v54, %s3132_s14 }
 0x3bc   : > { %1961 = vrot.lane.b32.xlu0 %v3635_v63, %s3132_s14 }
 0x3bd   : > { %v4209_v51 = vpop.permute.xlu1 %1645  ;;  %v4211_v38 = vpop.permute.xlu0 %1599 }
 0x3bf   : > { %1655 = vrot.lane.b32.xlu1 %v1173_v27, %s3128_s17  ;;  %v1838_v27 = vrot.slane %v2647_v13, 1 }
 0x3c0   : > { %1631 = vrot.lane.b32.xlu0 %v4073_v36, %s3128_s17  ;;  %s2710_s17 = sshll.u32 %s3105_s12, 4 }
 0x3c1   : > { %v1978_v3 = vpop.permute.xlu1 %1977  ;;  %v1892_v42 = vpop.permute.xlu0 %1891 }
 0x3c2   : > { %v2136_v41 = vsel %vm2127_vm15, %v2119_v30, %v1978_v3 }
 0x3c3   : > { %2899 = vmatprep.mubr.msk.f32.mxu1 %vm2160_vm0, %v2136_v41  ;;  %1741 = vrot.lane.b32.xlu1 %v1953_v54, %s3129_s18 }
 0x3c4   : > { %1717 = vrot.lane.b32.xlu0 %v3635_v63, %s3129_s18  ;;  %v2035_v63 = vsel %vm2025_vm9, %v2018_v58, %v4067_v22 }
 0x3c5   : > { %v1465_v36 = vpop.permute.xlu1 %1464  ;;  %v1441_v1 = vpop.permute.xlu0 %1440  ;;  %v2052_v24 = vsel %vm2042_vm10, %v2035_v63, %v4106_v18  ;;  %v2665_v18 = vld [vmem:[%s3616_s1 + $0xd8] sm:$0xff] }
 0x3c6   : > { %v2069_v29 = vsel %vm2059_vm11, %v2052_v24, %v4143_v25  ;;  %v2648_v25 = vld [vmem:[%s3616_s1 + $0x50] sm:$0xff]  ;;  %v1868_v60 = vrot.slane %v2665_v18, 1  ;;  %v2009_v47 = vsel %vm1182_vm8, %v3845_v8, %v1441_v1  ;;  %v2021_v49 = vsel %vm1182_vm8, %v3819_v43, %v1465_v36 }
 0x3c7   : > { %1987 = vrot.lane.b32.xlu1 %v1955_v14, %s3132_s14  ;;  %v2086_v22 = vsel %vm2076_vm12, %v2069_v29, %v1732_v4  ;;  %v1839_v44 = vrot.slane %v2648_v25, 1  ;;  %v2667_v4 = vld [vmem:[%s3616_s1 + $0xe8] sm:$0x3]  ;;  %v1956_v43 = vrot.slane %v2665_v18, 2  ;;  %v1927_v26 = vrot.slane %v2648_v25, 2 }
 0x3c8   : > { %1963 = vrot.lane.b32.xlu0 %v1925_v55, %s3132_s14  ;;  %v2103_v9 = vsel %vm2093_vm13, %v2086_v22, %v1796_v37  ;;  %v1870_v45 = vsel %vm1133_vm7, %v1868_v60, %v1869_v57  ;;  %v1871_v10 = vrot.slane %v2667_v4, 1  ;;  %v1841_v37 = vrot.slane %v2649_v23, 1 }
 0x3c9   : > { %v4241_v17 = vpop.permute.xlu1 %1733  ;;  %v4243_v11 = vpop.permute.xlu0 %1647  ;;  %v2120_v61 = vsel %vm2110_vm14, %v2103_v9, %v1892_v42  ;;  %v1840_v33 = vsel %vm1133_vm7, %v1838_v27, %v1839_v44  ;;  %v1959_v59 = vrot.slane %v2667_v4, 2  ;;  %v1928_v36 = vsel %vm1488_vm6, %v1926_v28, %v1927_v26 }
 0x3ca   : > { %v1872_v46 = vsel %vm1133_vm7, %v1869_v57, %v1871_v10  ;;  %v1842_v3 = vsel %vm1133_vm7, %v1839_v44, %v1841_v37  ;;  %v1929_v1 = vrot.slane %v2649_v23, 2  ;;  %v4642_v44 = vld [vmem:[#allocation10_spill] sm:$0xff] }
 0x3cb   : > { %1743 = vrot.lane.b32.xlu1 %v1712_v15, %s3129_s18  ;;  %v1960_v58 = vsel %vm1488_vm6, %v1957_v56, %v1959_v59 }
 0x3cc   : > { %1719 = vrot.lane.b32.xlu0 %v1682_v34, %s3129_s18  ;;  %v1930_v24 = vsel %vm1488_vm6, %v1927_v26, %v1929_v1  ;;  %s2705_s18 = sshll.u32 %s3109_s13, 5  ;;  %s2483_s13 = sshll.u32 %s3266_s21, 4  ;;  %s4551_s13 = int_to_ptr.vmem [resolvable:$true] %s2483_s13 }
 0x3cd   : > { %v1443_v35 = vpop.permute.xlu1 %1442  ;;  %v1980_v0 = vpop.permute.xlu0 %1979  ;;  %p3034_p4 = scmp.lt.s32.totalorder %s4551_s13, %s3032_s29 }
 0x3ce   : > { %v2137_v39 = vsel %vm2127_vm15, %v2120_v61, %v1980_v0  ;;  %v2010_v6 = vsel %vm1182_vm8, %v3848_v53, %v1443_v35  ;;  %v1958_v53 = vsel %vm1488_vm6, %v1956_v43, %v1957_v56  ;;  %v2019_v0 = vsel %vm1182_vm8, %v3770_v19, %v4145_v16 }
 0x3cf   : > { %1805 = vrot.lane.b32.xlu1 %v2665_v18, %s3130_s24  ;;  %2900 = vmatmul.mubr.msk.f32.gmra.mrb[4].mxu1 %vm2160_vm0, %v2137_v39 }
 0x3d0   : > { %1781 = vrot.lane.b32.xlu0 %v2647_v13, %s3130_s24  ;;  %v2036_v13 = vsel %vm2025_vm9, %v2019_v0, %v4174_v2 }
 0x3d1   : > { %v1530_v32 = vpop.permute.xlu1 %1529  ;;  %v1467_v62 = vpop.permute.xlu0 %1466 }
 0x3d2   : > { %v2026_v31 = vsel %vm2025_vm9, %v2009_v47, %v1530_v32  ;;  %v2022_v41 = vsel %vm1182_vm8, %v3823_v50, %v1467_v62 }
 0x3d3   : > { %1807 = vrot.lane.b32.xlu1 %v2666_v12, %s3130_s24  ;;  %v2053_v12 = vsel %vm2042_vm10, %v2036_v13, %v4190_v21 }
 0x3d4   : > { %1783 = vrot.lane.b32.xlu0 %v2648_v25, %s3130_s24  ;;  %v2070_v60 = vsel %vm2059_vm11, %v2053_v12, %v4209_v51  ;;  %v2020_v51 = vsel %vm1182_vm8, %v4642_v44, %v4176_v40  ;;  %s2480_s24 = sadd.s32 %s2710_s17, %s2705_s18  ;;  %s3033_s17 = scalar_lea.vmem %s3032_s29, 4096 }
 0x3d5   : > { %v4272_v54 = vpop.permute.xlu1 %1735  ;;  %v1554_v8 = vpop.permute.xlu0 %1553  ;;  %v2087_v57 = vsel %vm2076_vm12, %v2070_v60, %v4241_v17  ;;  %v2037_v17 = vsel %vm2025_vm9, %v2020_v51, %v4192_v20  ;;  %s2706_s12 = sshll.u32 %s2480_s24, 7 }
 0x3d6   : > { %v2038_v7 = vsel %vm2025_vm9, %v2021_v49, %v1554_v8  ;;  %v2054_v4 = vsel %vm2042_vm10, %v2037_v17, %v4211_v38  ;;  %s4548_s19 = scalar_lea.hbm %s4622_s9, %s2706_s12 }
 0x3d7   : > { %1901 = vrot.lane.b32.xlu1 %v1870_v45, %s3131_s25  ;;  %v2071_v23 = vsel %vm2059_vm11, %v2054_v4, %v4243_v11 }
 0x3d8   : > { %1877 = vrot.lane.b32.xlu0 %v1840_v33, %s3131_s25  ;;  %v2088_v45 = vsel %vm2076_vm12, %v2071_v23, %v4272_v54 }
 0x3d9   : > { %v1532_v52 = vpop.permute.xlu1 %1531  ;;  %v1798_v30 = vpop.permute.xlu0 %1797 }
 0x3da   : > { %v2027_v42 = vsel %vm2025_vm9, %v2010_v6, %v1532_v52  ;;  %v2104_v47 = vsel %vm2093_vm13, %v2087_v57, %v1798_v30  ;;  %v4643_v6 = vld [vmem:[#allocation11_spill] sm:$0xff] }
 0x3db   : > { %1903 = vrot.lane.b32.xlu1 %v1872_v46, %s3131_s25 }
 0x3dc   : > { %1879 = vrot.lane.b32.xlu0 %v1842_v3, %s3131_s25 }
 0x3dd   : > { %v1578_v14 = vpop.permute.xlu1 %1577  ;;  %v1556_v5 = vpop.permute.xlu0 %1555 }
 0x3de   : > { %v2043_v55 = vsel %vm2042_vm10, %v2026_v31, %v1578_v14  ;;  %v2039_v48 = vsel %vm2025_vm9, %v2022_v41, %v1556_v5 }
 0x3df   : > { %1989 = vrot.lane.b32.xlu1 %v1958_v53, %s3132_s14 }
 0x3e0   : > { %1965 = vrot.lane.b32.xlu0 %v1928_v36, %s3132_s14 }
 0x3e1   : > { %v1800_v63 = vpop.permute.xlu1 %1799  ;;  %v1602_v15 = vpop.permute.xlu0 %1601 }
 0x3e2   : > { %v4296_v50 = vsel %vm2042_vm10, %v2038_v7, %v1602_v15  ;;  %v2105_v10 = vsel %vm2093_vm13, %v2088_v45, %v1800_v63  ;;  %v3025_v7 = vld [vmem:[%s3616_s1 + $0x18] sm:$0xff] }
 0x3e3   : > { %1991 = vrot.lane.b32.xlu1 %v1960_v58, %s3132_s14 }
 0x3e4   : > { %1967 = vrot.lane.b32.xlu0 %v1930_v24, %s3132_s14 }
 0x3e5   : > { %v1580_v34 = vpop.permute.xlu1 %1579  ;;  %v1894_v29 = vpop.permute.xlu0 %1893 }
 0x3e6   : > { %v2044_v22 = vsel %vm2042_vm10, %v2027_v42, %v1580_v34  ;;  %v2121_v27 = vsel %vm2110_vm14, %v2104_v47, %v1894_v29 }
 0x3e9   : > { %v1626_v9 = vpop.permute.xlu1 %1625  ;;  %v1604_v18 = vpop.permute.xlu0 %1603 }
 0x3ea   : > { %v2060_v61 = vsel %vm2059_vm11, %v2043_v55, %v1626_v9  ;;  %v4303_v35 = vsel %vm2042_vm10, %v2039_v48, %v1604_v18 }
 0x3ed   : > { %v1896_v39 = vpop.permute.xlu1 %1895  ;;  %v1650_v25 = vpop.permute.xlu0 %1649 }
 0x3ee   : > { %v2122_v8 = vsel %vm2110_vm14, %v2105_v10, %v1896_v39  ;;  %v2072_v24 = vsel %vm2059_vm11, %v4296_v50, %v1650_v25 }
 0x3f1   : > { %v1445_v32 = vpop.permute.xlu1 %1444  ;;  %v1982_v19 = vpop.permute.xlu0 %1981 }
 0x3f2   : > { %v2138_v16 = vsel %vm2127_vm15, %v2121_v27, %v1982_v19  ;;  %v2011_v11 = vsel %vm1182_vm8, %v3025_v7, %v1445_v32 }
 0x3f3   : > { %2902 = vmatprep.mubr.msk.f32.mxu1 %vm2160_vm0, %v2138_v16 }
 0x3f5   : > { %v1628_v2 = vpop.permute.xlu1 %1627 }
 0x3f6   : > { %v2061_v21 = vsel %vm2059_vm11, %v2044_v22, %v1628_v2  ;;  %v1469_v62 = vpop.permute.xlu0 %1468 }
 0x3f7   : > { %v2023_v54 = vsel %vm1182_vm8, %v4643_v6, %v1469_v62 }
 0x3f9   : > { %v1714_v31 = vpop.permute.xlu1 %1713 }
 0x3fa   : > { %v1652_v49 = vpop.permute.xlu0 %1651  ;;  %v2077_v22 = vsel %vm2076_vm12, %v2060_v61, %v1714_v31 }
 0x3fb   : > { %v2073_v47 = vsel %vm2059_vm11, %v4303_v35, %v1652_v49 }
 0x3fd   : > { %v1984_v33 = vpop.permute.xlu1 %1983 }
 0x3fe   : > { %v2139_v40 = vsel %vm2127_vm15, %v2122_v8, %v1984_v33  ;;  %v1738_v37 = vpop.permute.xlu0 %1737 }
 0x3ff   : > { %2903 = vmatmul.mubr.msk.f32.gmra.mrb[6].mxu1 %vm2160_vm0, %v2139_v40  ;;  %v2089_v29 = vsel %vm2076_vm12, %v2072_v24, %v1738_v37  ;;  %v4644_v40 = vld [vmem:[#allocation12_spill] sm:$0xff] }
 0x401   : > { %v4336_v20 = vpop.permute.xlu1 %1470 }
 0x402   : > { %v4338_v38 = vpop.permute.xlu0 %1446  ;;  %v2024_v37 = vsel %vm1182_vm8, %v4644_v40, %v4336_v20 }
 0x405   : > { %v1558_v43 = vpop.permute.xlu1 %1557 }
 0x406   : > { %v2040_v56 = vsel %vm2025_vm9, %v2023_v54, %v1558_v43  ;;  %v1534_v46 = vpop.permute.xlu0 %1533 }
 0x407   : > { %v2028_v28 = vsel %vm2025_vm9, %v2011_v11, %v1534_v46 }
 0x409   : > { %v1740_v26 = vpop.permute.xlu1 %1739 }
 0x40a   : > { %v1716_v52 = vpop.permute.xlu0 %1715  ;;  %v2090_v32 = vsel %vm2076_vm12, %v2073_v47, %v1740_v26 }
 0x40b   : > { %v2078_v19 = vsel %vm2076_vm12, %v2061_v21, %v1716_v52  ;;  %v3026_v52 = vld [vmem:[%s3616_s1 + $0x20] sm:$0xff]  ;;  %s3027_s1 = scalar_lea.vmem %s4551_s13, 2048 }
 0x40c   : > { %p3028_p0 = scmp.ne.s32.totalorder %s4551_s13, %s3027_s1  ;;  %p3035_p5 = scmp.lt.s32.totalorder %s3033_s17, %s3027_s1 }
 0x40d   : > { %v1802_v30 = vpop.permute.xlu1 %1801 }
 0x40e   : > { %v1778_v3 = vpop.permute.xlu0 %1777  ;;  %v2106_v9 = vsel %vm2093_vm13, %v2089_v29, %v1802_v30  ;;  %v2012_v30 = vsel %vm1182_vm8, %v3026_v52, %v4338_v38  ;;  %p3029_p1 = pnand %p3028_p0, %p3236_p3  ;;  %p3036_p6 = por %p3035_p5, %p3034_p4 }
 0x40f   : > { %v2094_v18 = vsel %vm2093_vm13, %v2077_v22, %v1778_v3 }
 0x410   : > { %p3030_p2 = pneg %p3029_p1 }
 0x411   : > { %v4346_v42 = vpop.permute.xlu1 %1559 }
 0x412   : > { %v4348_v53 = vpop.permute.xlu0 %1535  ;;  %v2041_v3 = vsel %vm2025_vm9, %v2024_v37, %v4346_v42  ;;  %p3037_p7 = pnand %p3036_p6, %p3030_p2 }
 0x415   : > { %v1606_v59 = vpop.permute.xlu1 %1605 }
 0x416   : > { %v1582_v41 = vpop.permute.xlu0 %1581  ;;  %v2057_v7 = vsel %vm2042_vm10, %v2040_v56, %v1606_v59 }
 0x417   : > { %v2045_v6 = vsel %vm2042_vm10, %v2028_v28, %v1582_v41  ;;  %v2029_v28 = vsel %vm2025_vm9, %v2012_v30, %v4348_v53 }
 0x419   : > { %v1804_v14 = vpop.permute.xlu1 %1803 }
 0x41a   : > { %v1780_v5 = vpop.permute.xlu0 %1779  ;;  %v2107_v16 = vsel %vm2093_vm13, %v2090_v32, %v1804_v14 }
 0x41b   : > { %v2095_v2 = vsel %vm2093_vm13, %v2078_v19, %v1780_v5 }
 0x41d   : > { %v1898_v36 = vpop.permute.xlu1 %1897 }
 0x41e   : > { %v1874_v1 = vpop.permute.xlu0 %1873  ;;  %v2123_v0 = vsel %vm2110_vm14, %v2106_v9, %v1898_v36 }
 0x41f   : > { %v2111_v12 = vsel %vm2110_vm14, %v2094_v18, %v1874_v1 }
 0x421   : > { %v1608_v55 = vpop.permute.xlu1 %1607 }
 0x422   : > { %v1584_v48 = vpop.permute.xlu0 %1583  ;;  %v2058_v59 = vsel %vm2042_vm10, %v2041_v3, %v1608_v55 }
 0x423   : > { %v2046_v36 = vsel %vm2042_vm10, %v2029_v28, %v1584_v48 }
 0x425   : > { %v1654_v58 = vpop.permute.xlu1 %1653 }
 0x426   : > { %v1630_v63 = vpop.permute.xlu0 %1629  ;;  %v2074_v54 = vsel %vm2059_vm11, %v2057_v7, %v1654_v58 }
 0x427   : > { %v2062_v46 = vsel %vm2059_vm11, %v2045_v6, %v1630_v63 }
 0x429   : > { %v1900_v15 = vpop.permute.xlu1 %1899 }
 0x42a   : > { %v1876_v34 = vpop.permute.xlu0 %1875  ;;  %v2124_v62 = vsel %vm2110_vm14, %v2107_v16, %v1900_v15 }
 0x42b   : > { %v2112_v51 = vsel %vm2110_vm14, %v2095_v2, %v1876_v34 }
 0x42d   : > { %v1986_v13 = vpop.permute.xlu1 %1985 }
 0x42e   : > { %v2140_v39 = vsel %vm2127_vm15, %v2123_v0, %v1986_v13  ;;  %v1962_v60 = vpop.permute.xlu0 %1961 }
 0x42f   : > { %v2128_v57 = vsel %vm2127_vm15, %v2111_v12, %v1962_v60  ;;  %2905 = vmatprep.mubr.msk.f32.mxu1 %vm2160_vm0, %v2140_v39 }
 0x430   : > { %2887 = vmatprep.mubr.msk.f32.mxu0 %vm2160_vm0, %v2128_v57 }
 0x431   : > { %v1656_v50 = vpop.permute.xlu1 %1655 }
 0x432   : > { %v1632_v61 = vpop.permute.xlu0 %1631  ;;  %v2075_v38 = vsel %vm2059_vm11, %v2058_v59, %v1656_v50 }
 0x433   : > { %v2063_v63 = vsel %vm2059_vm11, %v2046_v36, %v1632_v61 }
 0x435   : > { %v1742_v25 = vpop.permute.xlu1 %1741 }
 0x436   : > { %v1718_v27 = vpop.permute.xlu0 %1717  ;;  %v2091_v26 = vsel %vm2076_vm12, %v2074_v54, %v1742_v25 }
 0x437   : > { %v2079_v20 = vsel %vm2076_vm12, %v2062_v46, %v1718_v27 }
 0x439   : > { %v1988_v44 = vpop.permute.xlu1 %1987 }
 0x43a   : > { %v2141_v17 = vsel %vm2127_vm15, %v2124_v62, %v1988_v44  ;;  %v1964_v4 = vpop.permute.xlu0 %1963 }
 0x43b   : > { %v2129_v31 = vsel %vm2127_vm15, %v2112_v51, %v1964_v4  ;;  %2906 = vmatmul.mubr.msk.f32.gmra.mrb[8].mxu1 %vm2160_vm0, %v2141_v17 }
 0x43c   : > { %2888 = vmatmul.mubr.msk.f32.vlgmr.msra.gmra.mrb[16].mxu0 %vm2160_vm0, %v2129_v31 }
 0x43d   : > { %v1744_v35 = vpop.permute.xlu1 %1743 }
 0x43e   : > { %v1720_v21 = vpop.permute.xlu0 %1719  ;;  %v2092_v53 = vsel %vm2076_vm12, %v2075_v38, %v1744_v35 }
 0x43f   : > { %v2080_v15 = vsel %vm2076_vm12, %v2063_v63, %v1720_v21 }
 0x441   : > { %v1806_v23 = vpop.permute.xlu1 %1805 }
 0x442   : > { %v1782_v49 = vpop.permute.xlu0 %1781  ;;  %v2108_v56 = vsel %vm2093_vm13, %v2091_v26, %v1806_v23 }
 0x443   : > { %v2096_v41 = vsel %vm2093_vm13, %v2079_v20, %v1782_v49 }
 0x445   : > { %v1808_v45 = vpop.permute.xlu1 %1807 }
 0x446   : > { %v1784_v10 = vpop.permute.xlu0 %1783  ;;  %v2109_v24 = vsel %vm2093_vm13, %v2092_v53, %v1808_v45 }
 0x447   : > { %v2097_v48 = vsel %vm2093_vm13, %v2080_v15, %v1784_v10  ;;  %v2685_v10 = vld [vmem:[%s4621_s8] ss:$0 sm:$0xff] }
 0x449   : > { %v1902_v8 = vpop.permute.xlu1 %1901 }
 0x44a   : > { %v1878_v33 = vpop.permute.xlu0 %1877  ;;  %v2125_v14 = vsel %vm2110_vm14, %v2108_v56, %v1902_v8 }
 0x44b   : > { %v2113_v42 = vsel %vm2110_vm14, %v2096_v41, %v1878_v33 }
 0x44d   : > { %v1904_v11 = vpop.permute.xlu1 %1903 }
 0x44e   : > { %v1880_v43 = vpop.permute.xlu0 %1879  ;;  %v2126_v34 = vsel %vm2110_vm14, %v2109_v24, %v1904_v11 }
 0x44f   : > { %v2114_v22 = vsel %vm2110_vm14, %v2097_v48, %v1880_v43 }
 0x451   : > { %v1990_v5 = vpop.permute.xlu1 %1989 }
 0x452   : > { %v2142_v1 = vsel %vm2127_vm15, %v2125_v14, %v1990_v5  ;;  %v1966_v58 = vpop.permute.xlu0 %1965 }
 0x453   : > { %v2130_v55 = vsel %vm2127_vm15, %v2113_v42, %v1966_v58  ;;  %2908 = vmatprep.mubr.msk.f32.mxu1 %vm2160_vm0, %v2142_v1 }
 0x454   : > { %2890 = vmatprep.mubr.msk.f32.mxu0 %vm2160_vm0, %v2130_v55 }
 0x455   : > { %v1992_v29 = vpop.permute.xlu1 %1991 }
 0x456   : > { %v2143_v9 = vsel %vm2127_vm15, %v2126_v34, %v1992_v29  ;;  %v1968_v18 = vpop.permute.xlu0 %1967 }
 0x457   : > { %v2131_v0 = vsel %vm2127_vm15, %v2114_v22, %v1968_v18  ;;  %2909 = vmatmul.mubr.msk.f32.gmra.mrb[10].mxu1 %vm2160_vm0, %v2143_v9  ;;  %v4412_v39 = vpop.f32.mrb[0].mxu0 }
 0x458   : > { %2891 = vmatmul.mubr.msk.f32.gmra.mrb[18].mxu0 %vm2160_vm0, %v2131_v0  ;;  %v4414_v60 = vpop.f32.mrb[1].mxu0 }
 0x45e   : > { %v2895_v13 = vpop.f32.mrb[0].mxu1 }
 0x45f   : > { %v2295_v12 = vpop.f32.mrb[1].mxu1  ;;  %v4416_v57 = vpop.f32.mrb[2].mxu0  ;;  %v2301_v11 = vadd.f32 %v2895_v13, %v2685_v10 }
 0x460   : > { %v4418_v50 = vpop.f32.mrb[3].mxu0  ;;  %v2296_v54 = vadd.f32 %v2685_v10, %v2295_v12  ;;  %v4466_v12 = vld [vmem:[%s4619_s6] ss:$0 sm:$0xff] }
 0x461   : > { %v2359_v46 = vmax.f32 %v2301_v11, 0.0  ;;  %v1292_v11 = vadd.f32 %v4466_v12, %v4418_v50 }
 0x462   : > { %v2358_v26 = vmax.f32 %v2296_v54, 0.0 }
 0x463   : > { %v4420_v61 = vpop.f32.mrb[4].mxu0 }
 0x464   : > { %v4422_v25 = vpop.f32.mrb[5].mxu0 }
 0x467   : > { %v4424_v47 = vpop.f32.mrb[6].mxu0 }
 0x468   : > { %v4426_v27 = vpop.f32.mrb[7].mxu0  ;;  %v1317_v54 = vadd.f32 %v4424_v47, %v4466_v12 }
 0x46b   : > { %v4428_v32 = vpop.f32.mrb[8].mxu0 }
 0x46c   : > { %v4430_v19 = vpop.f32.mrb[9].mxu0  ;;  %v1327_v50 = vadd.f32 %v4428_v32, %v4466_v12 }
 0x46f   : > { %v4432_v16 = vpop.f32.mrb[10].mxu0 }
 0x470   : > { %v4434_v2 = vpop.f32.mrb[11].mxu0  ;;  %v1337_v32 = vadd.f32 %v4432_v16, %v4466_v12 }
 0x473   : > { %v4436_v62 = vpop.f32.mrb[12].mxu0 }
 0x474   : > { %v4438_v51 = vpop.f32.mrb[13].mxu0  ;;  %v1347_v16 = vadd.f32 %v4436_v62, %v4466_v12 }
 0x476   : > { %v1373_v62 = vmax.f32 %v1347_v16, 0.0 }
 0x477   : > { %v4440_v4 = vpop.f32.mrb[14].mxu0 }
 0x478   : > { %v4442_v31 = vpop.f32.mrb[15].mxu0 }
 0x47e   : > { %v2898_v44 = vpop.f32.mrb[2].mxu1 }
 0x47f   : > { %v2305_v17 = vpop.f32.mrb[3].mxu1  ;;  %v2311_v59 = vadd.f32 %v2898_v44, %v2685_v10  ;;  %v1287_v44 = vadd.f32 %v4412_v39, %v4466_v12 }
 0x480   : > { %v2306_v14 = vadd.f32 %v2685_v10, %v2305_v17  ;;  %v1282_v17 = vadd.f32 %v4466_v12, %v4414_v60 }
 0x481   : > { %v2361_v36 = vmax.f32 %v2311_v59, 0.0 }
 0x482   : > { %v2360_v42 = vmax.f32 %v2306_v14, 0.0 }
 0x4a2   : > { %v2901_v35 = vpop.f32.mrb[4].mxu1 }
 0x4a3   : > { %v2315_v21 = vpop.f32.mrb[5].mxu1  ;;  %v2321_v38 = vadd.f32 %v2901_v35, %v2685_v10  ;;  %v1361_v35 = vmax.f32 %v1287_v44, 0.0 }
 0x4a4   : > { %v2316_v1 = vadd.f32 %v2685_v10, %v2315_v21  ;;  %v1307_v21 = vadd.f32 %v4420_v61, %v4466_v12 }
 0x4a5   : > { %v2363_v58 = vmax.f32 %v2321_v38, 0.0 }
 0x4a6   : > { %v2362_v53 = vmax.f32 %v2316_v1, 0.0  ;;  %v1371_v1 = vmax.f32 %v1337_v32, 0.0 }
 0x4d2   : > { %v2904_v23 = vpop.f32.mrb[6].mxu1 }
 0x4d3   : > { %v2325_v49 = vpop.f32.mrb[7].mxu1  ;;  %v2331_v63 = vadd.f32 %v2904_v23, %v2685_v10  ;;  %v1360_v23 = vmax.f32 %v1282_v17, 0.0 }
 0x4d4   : > { %v2326_v55 = vadd.f32 %v2685_v10, %v2325_v49  ;;  %v1302_v49 = vadd.f32 %v4466_v12, %v4422_v25 }
 0x4d5   : > { %v2365_v15 = vmax.f32 %v2331_v63, 0.0 }
 0x4d6   : > { %v2364_v48 = vmax.f32 %v2326_v55, 0.0  ;;  %v1364_v60 = vmax.f32 %v1302_v49, 0.0 }
 0x50e   : > { %v2907_v45 = vpop.f32.mrb[8].mxu1 }
 0x50f   : > { %v2889_v8 = vpop.f32.mrb[16].mxu0  ;;  %v2335_v33 = vpop.f32.mrb[9].mxu1  ;;  %v2341_v24 = vadd.f32 %v2907_v45, %v2685_v10 }
 0x510   : > { %v2281_v40 = vadd.f32 %v2889_v8, %v2685_v10  ;;  %v2275_v37 = vpop.f32.mrb[17].mxu0  ;;  %v2336_v34 = vadd.f32 %v2685_v10, %v2335_v33  ;;  %v1365_v33 = vmax.f32 %v1307_v21, 0.0 }
 0x511   : > { %v2276_v7 = vadd.f32 %v2685_v10, %v2275_v37  ;;  %v2367_v29 = vmax.f32 %v2341_v24, 0.0  ;;  %v1357_v24 = vadd.f32 %v4440_v4, %v4466_v12 }
 0x512   : > { %v2355_v6 = vmax.f32 %v2281_v40, 0.0  ;;  %v2366_v9 = vmax.f32 %v2336_v34, 0.0 }
 0x513   : > { %v2354_v43 = vmax.f32 %v2276_v7, 0.0  ;;  %v1297_v7 = vadd.f32 %v4416_v57, %v4466_v12  ;;  %v1375_v4 = vmax.f32 %v1357_v24, 0.0 }
 0x514   : > { %2388 = vrot.lane.b32.xlu1 %v2355_v6, %s3126_s26 }
 0x515   : > { %2386 = vrot.lane.b32.xlu0 %v2354_v43, %s3126_s26  ;;  %v1363_v6 = vmax.f32 %v1297_v7, 0.0  ;;  %v1362_v43 = vmax.f32 %v1292_v11, 0.0 }
 0x518   : > { %2396 = vrot.lane.b32.xlu1 %v2359_v46, %s3126_s26  ;;  %v1312_v46 = vadd.f32 %v4466_v12, %v4426_v27  ;;  %v1322_v27 = vadd.f32 %v4466_v12, %v4430_v19  ;;  %v1332_v19 = vadd.f32 %v4466_v12, %v4434_v2  ;;  %v1342_v2 = vadd.f32 %v4466_v12, %v4438_v51 }
 0x519   : > { %2394 = vrot.lane.b32.xlu0 %v2358_v26, %s3126_s26  ;;  %v1352_v51 = vadd.f32 %v4466_v12, %v4442_v31 }
 0x51a   : > { %v1366_v47 = vmax.f32 %v1312_v46, 0.0  ;;  %v1368_v14 = vmax.f32 %v1322_v27, 0.0 }
 0x52a   : > { %v2910_v52 = vpop.f32.mrb[10].mxu1 }
 0x52b   : > { %v2892_v30 = vpop.f32.mrb[18].mxu0  ;;  %v2345_v3 = vpop.f32.mrb[11].mxu1  ;;  %v2351_v22 = vadd.f32 %v2910_v52, %v2685_v10 }
 0x52c   : > { %v2291_v20 = vadd.f32 %v2892_v30, %v2685_v10  ;;  %v2285_v56 = vpop.f32.mrb[19].mxu0  ;;  %v2346_v18 = vadd.f32 %v2685_v10, %v2345_v3  ;;  %v1367_v3 = vmax.f32 %v1317_v54, 0.0 }
 0x52d   : > { %v2286_v28 = vadd.f32 %v2685_v10, %v2285_v56  ;;  %v2369_v0 = vmax.f32 %v2351_v22, 0.0 }
 0x52e   : > { %v2357_v41 = vmax.f32 %v2291_v20, 0.0  ;;  %v2368_v13 = vmax.f32 %v2346_v18, 0.0  ;;  %v1374_v18 = vmax.f32 %v1352_v51, 0.0 }
 0x52f   : > { %v2356_v5 = vmax.f32 %v2286_v28, 0.0 }
 0x530   : > { %2392 = vrot.lane.b32.xlu1 %v2357_v41, %s3126_s26  ;;  %v1369_v41 = vmax.f32 %v1327_v50, 0.0 }
 0x531   : > { %2390 = vrot.lane.b32.xlu0 %v2356_v5, %s3126_s26 }
 0x534   : > { %2400 = vrot.lane.b32.xlu1 %v2361_v36, %s3126_s26 }
 0x535   : > { %2398 = vrot.lane.b32.xlu0 %v2360_v42, %s3126_s26 }
 0x538   : > { %2404 = vrot.lane.b32.xlu1 %v2363_v58, %s3126_s26  ;;  %v1370_v58 = vmax.f32 %v1332_v19, 0.0 }
 0x539   : > { %2402 = vrot.lane.b32.xlu0 %v2362_v53, %s3126_s26 }
 0x53c   : > { %2408 = vrot.lane.b32.xlu1 %v2365_v15, %s3126_s26 }
 0x53d   : > { %2406 = vrot.lane.b32.xlu0 %v2364_v48, %s3126_s26  ;;  %v1372_v48 = vmax.f32 %v1342_v2, 0.0 }
 0x540   : > { %2412 = vrot.lane.b32.xlu1 %v2367_v29, %s3126_s26 }
 0x541   : > { %2410 = vrot.lane.b32.xlu0 %v2366_v9, %s3126_s26 }
 0x544   : > { %2416 = vrot.lane.b32.xlu1 %v2369_v0, %s3126_s26 }
 0x545   : > { %2414 = vrot.lane.b32.xlu0 %v2368_v13, %s3126_s26 }
 0x586   : > { %v2389_v45 = vpop.permute.xlu1 %2388 }
 0x587   : > { %v2435_v10 = vsel %vm1182_vm8, %v1361_v35, %v2389_v45  ;;  %v2387_v8 = vpop.permute.xlu0 %2386 }
 0x588   : > { %2451 = vst.msk [vmem:[%s3266_s21 + $0x8] sm:$0xff] %vm2025_vm9, %v2435_v10  ;;  %v2434_v39 = vsel %vm1182_vm8, %v1360_v23, %v2387_v8 }
 0x589   : > { %2450 = vst.msk [vmem:[%s3266_s21] sm:$0xff] %vm2025_vm9, %v2434_v39 }
 0x58a   : > { %v2397_v40 = vpop.permute.xlu1 %2396 }
 0x58b   : > { %v2439_v61 = vsel %vm1182_vm8, %v1365_v33, %v2397_v40  ;;  %v2395_v37 = vpop.permute.xlu0 %2394 }
 0x58c   : > { %2455 = vst.msk [vmem:[%s3266_s21 + $0x28] sm:$0xff] %vm2025_vm9, %v2439_v61  ;;  %v2438_v25 = vsel %vm1182_vm8, %v1364_v60, %v2395_v37 }
 0x58d   : > { %2454 = vst.msk [vmem:[%s3266_s21 + $0x20] sm:$0xff] %vm2025_vm9, %v2438_v25 }
 0x5a2   : > { %v2393_v26 = vpop.permute.xlu1 %2392 }
 0x5a3   : > { %v2437_v52 = vsel %vm1182_vm8, %v1363_v6, %v2393_v26  ;;  %v2391_v30 = vpop.permute.xlu0 %2390 }
 0x5a4   : > { %2453 = vst.msk [vmem:[%s3266_s21 + $0x18] sm:$0xff] %vm2025_vm9, %v2437_v52  ;;  %v2436_v57 = vsel %vm1182_vm8, %v1362_v43, %v2391_v30 }
 0x5a5   : > { %2452 = vst.msk [vmem:[%s3266_s21 + $0x10] sm:$0xff] %vm2025_vm9, %v2436_v57 }
 0x5a6   : > { %v2401_v20 = vpop.permute.xlu1 %2400 }
 0x5a7   : > { %v2441_v56 = vsel %vm1182_vm8, %v1367_v3, %v2401_v20  ;;  %v2399_v28 = vpop.permute.xlu0 %2398 }
 0x5a8   : > { %2457 = vst.msk [vmem:[%s3266_s21 + $0x38] sm:$0xff] %vm2025_vm9, %v2441_v56  ;;  %v2440_v59 = vsel %vm1182_vm8, %v1366_v47, %v2399_v28 }
 0x5a9   : > { %2456 = vst.msk [vmem:[%s3266_s21 + $0x30] sm:$0xff] %vm2025_vm9, %v2440_v59 }
 0x5aa   : > { %v2405_v5 = vpop.permute.xlu1 %2404 }
 0x5ab   : > { %v2443_v36 = vsel %vm1182_vm8, %v1369_v41, %v2405_v5  ;;  %v2403_v38 = vpop.permute.xlu0 %2402 }
 0x5ac   : > { %2459 = vst.msk [vmem:[%s3266_s21 + $0x48] sm:$0xff] %vm2025_vm9, %v2443_v36  ;;  %v2442_v42 = vsel %vm1182_vm8, %v1368_v14, %v2403_v38 }
 0x5ad   : > { %2458 = vst.msk [vmem:[%s3266_s21 + $0x40] sm:$0xff] %vm2025_vm9, %v2442_v42 }
 0x5ae   : > { %v2409_v63 = vpop.permute.xlu1 %2408 }
 0x5af   : > { %v2445_v53 = vsel %vm1182_vm8, %v1371_v1, %v2409_v63  ;;  %v2407_v55 = vpop.permute.xlu0 %2406 }
 0x5b0   : > { %2461 = vst.msk [vmem:[%s3266_s21 + $0x58] sm:$0xff] %vm2025_vm9, %v2445_v53  ;;  %v2444_v15 = vsel %vm1182_vm8, %v1370_v58, %v2407_v55 }
 0x5b1   : > { %2460 = vst.msk [vmem:[%s3266_s21 + $0x50] sm:$0xff] %vm2025_vm9, %v2444_v15 }
 0x5b2   : > { %v2413_v34 = vpop.permute.xlu1 %2412 }
 0x5b3   : > { %v2447_v29 = vsel %vm1182_vm8, %v1373_v62, %v2413_v34  ;;  %v2411_v22 = vpop.permute.xlu0 %2410 }
 0x5b4   : > { %2463 = vst.msk [vmem:[%s3266_s21 + $0x68] sm:$0xff] %vm2025_vm9, %v2447_v29  ;;  %v2446_v9 = vsel %vm1182_vm8, %v1372_v48, %v2411_v22 }
 0x5b5   : > { %2462 = vst.msk [vmem:[%s3266_s21 + $0x60] sm:$0xff] %vm2025_vm9, %v2446_v9 }
 0x5b6   : > { %v2417_v0 = vpop.permute.xlu1 %2416 }
 0x5b7   : > { %v2449_v31 = vsel %vm1182_vm8, %v1375_v4, %v2417_v0  ;;  %v2415_v13 = vpop.permute.xlu0 %2414 }
 0x5b8   : > { %2465 = vst.msk [vmem:[%s3266_s21 + $0x78] sm:$0xff] %vm2025_vm9, %v2449_v31  ;;  %v2448_v12 = vsel %vm1182_vm8, %v1374_v18, %v2415_v13 }
 0x5b9   : > { %2464 = vst.msk [vmem:[%s3266_s21 + $0x70] sm:$0xff] %vm2025_vm9, %v2448_v12 }
 0x5ba   : > { %3040 = shalt.err (!%p3037_p7)
}
 0x5bb   : > { %s3041_s21 = scalar_lea.hbm %s4548_s19, 2048  ;;  %s3045_s12 = scalar_lea.hbm %s4622_s9, 8192 }
 0x5bc   : > { %p3042_p9 = scmp.ne.s32.totalorder %s4548_s19, %s3041_s21  ;;  %p3046_p12 = scmp.lt.u32.totalorder %s4548_s19, %s4622_s9 }
 0x5bd   : > { %p3047_p13 = scmp.lt.u32.totalorder %s3045_s12, %s3041_s21  ;;  %p3049_p1 = scmp.lt.u32.totalorder %s3041_s21, %s4548_s19 }
 0x5be   : > { %p3043_p10 = pnand %p3042_p9, %p3236_p3 }
 0x5bf   : > { %p3048_p0 = por %p3047_p13, %p3046_p12 }
 0x5c0   : > { %p3044_p11 = pneg %p3043_p10 }
 0x5c1   : > { %p3050_p2 = por %p3049_p1, %p3048_p0 }
 0x5c3   : > { %p3051_p4 = pnand %p3050_p2, %p3044_p11 }
 0x5c5   : > { %3054 = shalt.err (!%p3051_p4)
}
 0x5c6   : > { %s3134_s20 = smov 128  }
 0x5c7   : > { %2939 = dma.vmem_to_hbm [thread:$0]  (%p3236_p3), %s4551_s13, 2048, %s4548_s19, %s4560_s0, %s3134_s20, %s3134_s20, %s3126_s26  }
 0x5c8 PF: > { %p2945_p5 = scmp.ge.s32.totalorder %s3121_s16, 2  ;;  %s2498_s1 = sand.u32 1, %s3093_s30  }
 0x5c9   : > { %s2499_s28 = scalar_lea.sflag [#allocation5], %s2498_s1 }
 0x5ca   : > { %p2942_p6 = pnand %p2945_p5, %p3245_p8 }
 0x5cc   : > { %3088 = dma.done.wait (!%p2942_p6), %s2499_s28, 2048  }
 0x5cd   : > { %3090 = vsyncadd (!%p2942_p6), %s2499_s28, 4294965248  ;;  %s22_s16 = sadd.s32 1, %s3121_s16   ;;  %s4646_s12 = sld [smem:[#allocation7_spill]] }
 0x5ce   : > { %p19_p7 = scmp.ge.s32.totalorder %s22_s16, 6   ;;  %s4647_s14 = sld [smem:[#allocation8_spill]] }
 0x5cf   : > { %s4648_s22 = sld [smem:[#allocation9_spill]]  ;;  %s4649_s30 = smov %s3097_s10 }
 0x5d0   : > { %s4650_s10 = smov %s3101_s11  ;;  %s4651_s11 = smov %s3254_s27 }
 0x5d1   : > { %s4652_s13 = smov %s3117_s15  ;;  %21 = sbr.rel (!%p19_p7) target bundleno = 8 (0x8), region = 99 }
 0x5d5   : > { %s4653_s15 = smov %s4648_s22 }
 0x5d8   :  { %2504 = vsyncpa [#allocation5], 1 }
 0x5d9   :  { %2506 = vsyncpa [#allocation5 + $0x1], 1 }

</bundles_post_ra>
